<compile_context>
chip_gen: v6e
topology: v6e:2x2x1
jax: 0.10.0
libtpu: 0.0.40
codegen_flags: <defaults>
</compile_context>

<pallas_src>
import functools
import math

import numpy as np

import jax
import jax.numpy as jnp
from jax.experimental import pallas as pl
from jax.experimental.pallas import tpu as pltpu


# ----------------------------- in-kernel helpers (traced) -------------------------------

def _layer_norm(x, ln, eps=1e-5):
    """x: (S, D) f32, ln: (2, D) f32 = [gamma; beta]."""
    mean = jnp.mean(x, axis=-1, keepdims=True)
    var = jnp.mean(jnp.square(x - mean), axis=-1, keepdims=True)
    return (x - mean) * jax.lax.rsqrt(var + eps) * ln[0][None, :] + ln[1][None, :]


def _mh_attention(qT, kvT, heads, mask, cdt, approx):
    """Multi-head attention for one (query tile, batch element).

    qT  : (D, Sq)    f32 -- transposed Q projection (head h = rows h*dk:(h+1)*dk).
    kvT : (2D, Skv)  f32 -- transposed fused K/V projection ([K^T ; V^T]).
    mask: (Sq, Skv) or None (masked_fill(mask == 0, -1e9) semantics).
    Returns the head-concatenated attention output, shape (Sq, D), f32.
    """
    D, Sq = qT.shape
    Skv = kvT.shape[1]
    dk = D // heads

    qT = qT * (1.0 / math.sqrt(dk))                       # fold 1/sqrt(dk) into Q once

    # Head split on the sublane axis: leading-dim reshapes (+ one batched
    # minor-2D transpose for Q).  All heads are then handled by a single
    # batched matmul per stage.
    q3 = jnp.transpose(qT.reshape(heads, dk, Sq), (0, 2, 1))   # (H, Sq, dk)
    kT3 = kvT[:D].reshape(heads, dk, Skv)                      # (H, dk, Skv)
    vT3 = kvT[D:].reshape(heads, dk, Skv)                      # (H, dk, Skv)

    # scores: one batched (over heads) MXU matmul
    s = jnp.einsum('hqd,hdk->hqk', q3.astype(cdt), kT3.astype(cdt),
                   preferred_element_type=jnp.float32)         # (H, Sq, Skv) f32
    if mask is not None:
        s = jnp.where(mask[None, :, :] == 0, -1e9, s)

    # numerically stable softmax, all statistics in f32
    s = s - jnp.max(s, axis=-1, keepdims=True)
    p = jnp.exp(s)
    p = p * pl.reciprocal(jnp.sum(p, axis=-1, keepdims=True), approx=approx)

    # output (computed transposed): one batched MXU matmul, then merge heads
    oT = jnp.einsum('hdk,hqk->hdq', vT3.astype(cdt), p.astype(cdt),
                    preferred_element_type=jnp.float32)        # (H, dk, Sq)
    return jnp.transpose(oT.reshape(D, Sq))                    # (Sq, D)


# ----------------------------- the fused decoder-layer kernel ---------------------------

def _decoder_layer_kernel(heads, has_mask, *refs):
    it = iter(refs)
    trg_q_ref = next(it)                         # (1, TQ, D)  query tile of trg
    trg_kv_ref = next(it)                        # (1, St, D)  full trg (self-attn K/V)
    mem_ref = next(it)                           # (1, Sm, D)  full memory (cross K/V)
    mask_ref = next(it) if has_mask else None    # (1, TQ, St) or absent
    (wq1_ref, bq1_ref, wkv1_ref, bkv1_ref, ln1_ref,
     wq2_ref, bq2_ref, wkv2_ref, bkv2_ref, ln2_ref,
     wff1_ref, bff1_ref, wff2_ref, bff2_ref, lnff_ref,
     out_ref) = it

    cdt = wq1_ref.dtype                          # matmul operand dtype (f32 or bf16)
    approx = cdt == jnp.bfloat16                 # EUP approx reciprocal only in bf16 mode
    D = trg_q_ref.shape[-1]

    trg_q = trg_q_ref[0].astype(jnp.float32)     # (TQ, D)
    trg_kv = trg_kv_ref[0].astype(jnp.float32)   # (St, D)
    mem = mem_ref[0].astype(jnp.float32)         # (Sm, D)
    mask = mask_ref[0] if has_mask else None     # (TQ, St) or None

    # ---- 1) masked self-attention + residual + LayerNorm -------------------------------
    # Attention projection weights are kept in torch (out_features, in_features) layout
    # so the projections are computed transposed:  q^T = Wq @ x^T.  This keeps the head
    # split on the sublane axis (no lane-dim reshuffles) and fuses K/V into one matmul.
    trg_qT = jnp.transpose(trg_q).astype(cdt)    # (D, TQ)
    trg_kvT = jnp.transpose(trg_kv).astype(cdt)  # (D, St)
    qT1 = jnp.dot(wq1_ref[...], trg_qT, preferred_element_type=jnp.float32) + bq1_ref[...]
    kvT1 = jnp.dot(wkv1_ref[...], trg_kvT, preferred_element_type=jnp.float32) + bkv1_ref[...]
    a1 = _mh_attention(qT1, kvT1, heads, mask, cdt, approx)
    x1 = _layer_norm(a1 + trg_q, ln1_ref[...])

    # ---- 2) cross-attention with the encoder memory (no mask) --------------------------
    x1T = jnp.transpose(x1).astype(cdt)          # (D, TQ)
    memT = jnp.transpose(mem).astype(cdt)        # (D, Sm)
    qT2 = jnp.dot(wq2_ref[...], x1T, preferred_element_type=jnp.float32) + bq2_ref[...]
    kvT2 = jnp.dot(wkv2_ref[...], memT, preferred_element_type=jnp.float32) + bkv2_ref[...]
    a2 = _mh_attention(qT2, kvT2, heads, None, cdt, approx)
    x2 = _layer_norm(a2 + x1, ln2_ref[...])

    # ---- 3) feed-forward + residual + LayerNorm -----------------------------------------
    # TODO(synk): nn.Dropout is treated as identity (inference semantics).
    # TODO(synk): chunk the Fd axis (inner loop / emit_pipeline) for very large feed_dim
    #             so the (TQ, Fd) hidden and both FFN weights need not be fully resident.
    h = jnp.dot(x2.astype(cdt), wff1_ref[...], preferred_element_type=jnp.float32) + bff1_ref[...]
    h = jnp.maximum(h, 0.0)
    y = jnp.dot(h.astype(cdt), wff2_ref[...], preferred_element_type=jnp.float32) + bff2_ref[...]
    out_ref[0] = _layer_norm(y + x2, lnff_ref[...]).astype(out_ref.dtype)


# ----------------------------- wrapper ---------------------------------------------------

def decoder_layer(memory, trg, params, heads, trg_mask=None, *,
                  q_tile=256, compute_dtype=jnp.float32):
    """Fused DecoderLayer forward.  memory: (B, Sm, D), trg: (B, St, D)."""
    B, St, D = trg.shape
    Bm, Sm, Dm = memory.shape
    assert Bm == B and Dm == D and D % heads == 0
    Fd = params["wff1"].shape[1]

    cdt = np.dtype(compute_dtype)
    has_mask = trg_mask is not None

    # query-tile size: a sublane-aligned tile that divides St (else whole sequence)
    if St % q_tile == 0 and q_tile % 8 == 0:
        TQ = q_tile
    else:
        TQ = St   # TODO(synk): pad St for ragged / non-divisible sequence lengths
    n_q = St // TQ

    # activations and big weights in the compute dtype; bias/LayerNorm params stay f32
    trg_c = trg.astype(cdt)
    mem_c = memory.astype(cdt)

    inputs = [trg_c, trg_c, mem_c]
    in_specs = [
        pl.BlockSpec((1, TQ, D), lambda b, qi: (b, qi, 0)),   # query tile of trg
        pl.BlockSpec((1, St, D), lambda b, qi: (b, 0, 0)),    # full trg   (self-attn K/V)
        pl.BlockSpec((1, Sm, D), lambda b, qi: (b, 0, 0)),    # full memory (cross-attn K/V)
    ]
    if has_mask:
        inputs.append(trg_mask.astype(jnp.float32))
        in_specs.append(pl.BlockSpec((1, TQ, St), lambda b, qi: (b, qi, 0)))

    param_arrays = [
        params["wq1"].astype(cdt), params["bq1"].astype(jnp.float32),
        params["wkv1"].astype(cdt), params["bkv1"].astype(jnp.float32),
        params["ln1"].astype(jnp.float32),
        params["wq2"].astype(cdt), params["bq2"].astype(jnp.float32),
        params["wkv2"].astype(cdt), params["bkv2"].astype(jnp.float32),
        params["ln2"].astype(jnp.float32),
        params["wff1"].astype(cdt), params["bff1"].astype(jnp.float32),
        params["wff2"].astype(cdt), params["bff2"].astype(jnp.float32),
        params["lnff"].astype(jnp.float32),
    ]

    def const_spec(arr):
        zeros = (0,) * arr.ndim
        # Grid-invariant blocks: Pallas fetches them once (index map never changes).
        # TODO(synk): pipeline_mode=pl.Buffered(1) would also single-buffer their VMEM.
        return pl.BlockSpec(arr.shape, lambda b, qi: zeros)

    inputs += param_arrays
    in_specs += [const_spec(a) for a in param_arrays]

    # explicit VMEM budget: double-buffered blocks + f32 working set, with headroom
    param_bytes = sum(math.prod(a.shape) * a.dtype.itemsize for a in param_arrays)
    act_bytes = (TQ * D + St * D + Sm * D) * cdt.itemsize + TQ * D * trg.dtype.itemsize
    mask_bytes = TQ * St * 4 if has_mask else 0
    work_bytes = 4 * (heads * TQ * max(St, Sm) + TQ * Fd + 8 * TQ * D + 2 * (St + Sm) * D)
    est = 2 * (act_bytes + mask_bytes + param_bytes) + work_bytes
    vmem_limit = int(min(max(est * 1.5, 32 * 1024 * 1024), 100 * 1024 * 1024))

    grid_spec = pltpu.PrefetchScalarGridSpec(
        num_scalar_prefetch=0,
        grid=(B, n_q),
        in_specs=in_specs,
        out_specs=pl.BlockSpec((1, TQ, D), lambda b, qi: (b, qi, 0)),
    )

    kernel = functools.partial(_decoder_layer_kernel, heads, has_mask)
    return pl.pallas_call(
        kernel,
        out_shape=jax.ShapeDtypeStruct((B, St, D), trg.dtype),
        grid_spec=grid_spec,
        compiler_params=pltpu.CompilerParams(
            dimension_semantics=("parallel", "parallel"),
            vmem_limit_bytes=vmem_limit,
        ),
    )(*inputs)


# ----------------------------- deterministic parameter init ------------------------------

def init_params(key, d_model, feed_dim):
    ks = jax.random.split(key, 4)

    def lin(k, fan_in, fan_out):
        # torch nn.Linear default init; weight in torch (out_features, in_features) layout
        bound = 1.0 / math.sqrt(fan_in)
        kw, kb = jax.random.split(k)
        w = jax.random.uniform(kw, (fan_out, fan_in), jnp.float32, -bound, bound)
        b = jax.random.uniform(kb, (fan_out,), jnp.float32, -bound, bound)
        return w, b

    def mha_params(k):
        kq, kk, kv = jax.random.split(k, 3)
        wq, bq = lin(kq, d_model, d_model)
        wk, bk = lin(kk, d_model, d_model)
        wv, bv = lin(kv, d_model, d_model)
        wkv = jnp.concatenate([wk, wv], axis=0)              # (2D, D)  [Wk ; Wv]
        bkv = jnp.concatenate([bk, bv])[:, None]             # (2D, 1)
        ln = jnp.stack([jnp.ones((d_model,), jnp.float32),
                        jnp.zeros((d_model,), jnp.float32)])  # (2, D) gamma/beta
        return wq, bq[:, None], wkv, bkv, ln

    wq1, bq1, wkv1, bkv1, ln1 = mha_params(ks[0])
    wq2, bq2, wkv2, bkv2, ln2 = mha_params(ks[1])
    wff1_t, bff1 = lin(ks[2], d_model, feed_dim)             # (Fd, D) torch layout
    wff2_t, bff2 = lin(ks[3], feed_dim, d_model)             # (D, Fd) torch layout
    lnff = jnp.stack([jnp.ones((d_model,), jnp.float32),
                      jnp.zeros((d_model,), jnp.float32)])
    return {
        "wq1": wq1, "bq1": bq1, "wkv1": wkv1, "bkv1": bkv1, "ln1": ln1,
        "wq2": wq2, "bq2": bq2, "wkv2": wkv2, "bkv2": bkv2, "ln2": ln2,
        "wff1": wff1_t.T, "bff1": bff1[None, :],             # FFN weights stored (in, out)
        "wff2": wff2_t.T, "bff2": bff2[None, :],
        "lnff": lnff,
    }


# ----------------------------- pure-JAX reference (mirrors the PyTorch module) -----------

def reference_decoder_layer(memory, trg, params, heads, trg_mask=None):
    def layer_norm(x, ln):
        mean = jnp.mean(x, axis=-1, keepdims=True)
        var = jnp.mean((x - mean) ** 2, axis=-1, keepdims=True)
        return (x - mean) / jnp.sqrt(var + 1e-5) * ln[0] + ln[1]

    def mha(q_in, kv_in, wq, bq, wkv, bkv, ln, mask):
        B, Sq, D = q_in.shape
        dk = D // heads
        q = q_in @ wq.T + bq[:, 0]
        kv = kv_in @ wkv.T + bkv[:, 0]
        k, v = kv[..., :D], kv[..., D:]
        q = q.reshape(B, -1, heads, dk).transpose(0, 2, 1, 3)
        k = k.reshape(B, -1, heads, dk).transpose(0, 2, 1, 3)
        v = v.reshape(B, -1, heads, dk).transpose(0, 2, 1, 3)
        att = q @ jnp.swapaxes(k, -1, -2)
        if mask is not None:
            att = jnp.where(mask[:, None] == 0, -1e9, att)
        att = jax.nn.softmax(att / math.sqrt(dk), axis=-1)
        x = att @ v
        x = x.transpose(0, 2, 1, 3).reshape(B, Sq, D)
        return layer_norm(x + q_in, ln)

    x = mha(trg, trg, params["wq1"], params["bq1"], params["wkv1"], params["bkv1"],
            params["ln1"], trg_mask)
    x = mha(x, memory, params["wq2"], params["bq2"], params["wkv2"], params["bkv2"],
            params["ln2"], None)
    h = jnp.maximum(x @ params["wff1"] + params["bff1"][0], 0.0)
    y = h @ params["wff2"] + params["bff2"][0]
    return layer_norm(y + x, params["lnff"])


# ----------------------------- main -------------------------------------------------------

if __name__ == "__main__":
    B, St, Sm = 2, 8, 8
    d_model, heads, feed_dim = 32, 4, 64

    key = jax.random.PRNGKey(0)
    k_trg, k_mem, k_par = jax.random.split(key, 3)
    trg = jax.random.normal(k_trg, (B, St, d_model), jnp.float32)
    memory = jax.random.normal(k_mem, (B, Sm, d_model), jnp.float32)
    params = init_params(k_par, d_model, feed_dim)

    # 1) f32 operands, no mask (tight check against the reference)
    out = jax.block_until_ready(decoder_layer(memory, trg, params, heads))
    ref = reference_decoder_layer(memory, trg, params, heads)
    assert out.shape == (B, St, d_model)
    assert jnp.allclose(out, ref, rtol=1e-4, atol=1e-4), (
        f"f32 no-mask max err {float(jnp.max(jnp.abs(out - ref)))}")

    # 2) f32 operands, causal target mask
    causal = jnp.tile(jnp.tril(jnp.ones((St, St), jnp.float32))[None], (B, 1, 1))
    out_m = jax.block_until_ready(decoder_layer(memory, trg, params, heads, trg_mask=causal))
    ref_m = reference_decoder_layer(memory, trg, params, heads, trg_mask=causal)
    assert jnp.allclose(out_m, ref_m, rtol=1e-4, atol=1e-4), (
        f"f32 masked max err {float(jnp.max(jnp.abs(out_m - ref_m)))}")

    # 3) bf16 matmul operands (f32 accumulation / stats) -- loose check vs. f32 reference
    out_bf16 = jax.block_until_ready(
        decoder_layer(memory, trg, params, heads, compute_dtype=jnp.bfloat16))
    assert float(jnp.max(jnp.abs(out_bf16 - ref))) < 0.25, (
        f"bf16 max err {float(jnp.max(jnp.abs(out_bf16 - ref)))}")

    print("KERNEL_OK")
</pallas_src>

<mosaic_0001>
module attributes {stable_mosaic.version = 11 : i64} {
  func.func @_decoder_layer_kernel(%arg0: i32, %arg1: i32, %arg2: memref<1x8x32xf32, #tpu.memory_space<vmem>>, %arg3: memref<1x8x32xf32, #tpu.memory_space<vmem>>, %arg4: memref<1x8x32xf32, #tpu.memory_space<vmem>>, %arg5: memref<32x32xf32, #tpu.memory_space<vmem>>, %arg6: memref<32x1xf32, #tpu.memory_space<vmem>>, %arg7: memref<64x32xf32, #tpu.memory_space<vmem>>, %arg8: memref<64x1xf32, #tpu.memory_space<vmem>>, %arg9: memref<2x32xf32, #tpu.memory_space<vmem>>, %arg10: memref<32x32xf32, #tpu.memory_space<vmem>>, %arg11: memref<32x1xf32, #tpu.memory_space<vmem>>, %arg12: memref<64x32xf32, #tpu.memory_space<vmem>>, %arg13: memref<64x1xf32, #tpu.memory_space<vmem>>, %arg14: memref<2x32xf32, #tpu.memory_space<vmem>>, %arg15: memref<32x64xf32, #tpu.memory_space<vmem>>, %arg16: memref<1x64xf32, #tpu.memory_space<vmem>>, %arg17: memref<64x32xf32, #tpu.memory_space<vmem>>, %arg18: memref<1x32xf32, #tpu.memory_space<vmem>>, %arg19: memref<2x32xf32, #tpu.memory_space<vmem>>, %arg20: memref<1x8x32xf32, #tpu.memory_space<vmem>>) attributes {dimension_semantics = [#tpu.dimension_semantics<parallel>, #tpu.dimension_semantics<parallel>], iteration_bounds = array<i64: 2, 1>, scalar_prefetch = 0 : i64, scratch_operands = 0 : i64, tpu.core_type = #tpu.core_type<tc>, window_params = [{transform_indices = @transform_0, window_bounds = array<i64: 1, 8, 32>}, {transform_indices = @transform_1, window_bounds = array<i64: 1, 8, 32>}, {transform_indices = @transform_2, window_bounds = array<i64: 1, 8, 32>}, {pipeline_mode = #tpu.pipeline_mode<synchronous>, transform_indices = @transform_3, window_bounds = array<i64: 32, 32>}, {pipeline_mode = #tpu.pipeline_mode<synchronous>, transform_indices = @transform_4, window_bounds = array<i64: 32, 1>}, {pipeline_mode = #tpu.pipeline_mode<synchronous>, transform_indices = @transform_5, window_bounds = array<i64: 64, 32>}, {pipeline_mode = #tpu.pipeline_mode<synchronous>, transform_indices = @transform_6, window_bounds = array<i64: 64, 1>}, {pipeline_mode = #tpu.pipeline_mode<synchronous>, transform_indices = @transform_7, window_bounds = array<i64: 2, 32>}, {pipeline_mode = #tpu.pipeline_mode<synchronous>, transform_indices = @transform_8, window_bounds = array<i64: 32, 32>}, {pipeline_mode = #tpu.pipeline_mode<synchronous>, transform_indices = @transform_9, window_bounds = array<i64: 32, 1>}, {pipeline_mode = #tpu.pipeline_mode<synchronous>, transform_indices = @transform_10, window_bounds = array<i64: 64, 32>}, {pipeline_mode = #tpu.pipeline_mode<synchronous>, transform_indices = @transform_11, window_bounds = array<i64: 64, 1>}, {pipeline_mode = #tpu.pipeline_mode<synchronous>, transform_indices = @transform_12, window_bounds = array<i64: 2, 32>}, {pipeline_mode = #tpu.pipeline_mode<synchronous>, transform_indices = @transform_13, window_bounds = array<i64: 32, 64>}, {pipeline_mode = #tpu.pipeline_mode<synchronous>, transform_indices = @transform_14, window_bounds = array<i64: 1, 64>}, {pipeline_mode = #tpu.pipeline_mode<synchronous>, transform_indices = @transform_15, window_bounds = array<i64: 64, 32>}, {pipeline_mode = #tpu.pipeline_mode<synchronous>, transform_indices = @transform_16, window_bounds = array<i64: 1, 32>}, {pipeline_mode = #tpu.pipeline_mode<synchronous>, transform_indices = @transform_17, window_bounds = array<i64: 2, 32>}, {transform_indices = @transform_18, window_bounds = array<i64: 1, 8, 32>}]} {
    %c0 = arith.constant 0 : index
    %c0_0 = arith.constant 0 : index
    %c0_1 = arith.constant 0 : index
    %0 = vector.load %arg2[%c0, %c0_0, %c0_1] : memref<1x8x32xf32, #tpu.memory_space<vmem>>, vector<1x8x32xf32>
    %1 = vector.shape_cast %0 : vector<1x8x32xf32> to vector<8x32xf32>
    %c0_2 = arith.constant 0 : index
    %c0_3 = arith.constant 0 : index
    %c0_4 = arith.constant 0 : index
    %2 = vector.load %arg3[%c0_2, %c0_3, %c0_4] : memref<1x8x32xf32, #tpu.memory_space<vmem>>, vector<1x8x32xf32>
    %3 = vector.shape_cast %2 : vector<1x8x32xf32> to vector<8x32xf32>
    %c0_5 = arith.constant 0 : index
    %c0_6 = arith.constant 0 : index
    %c0_7 = arith.constant 0 : index
    %4 = vector.load %arg4[%c0_5, %c0_6, %c0_7] : memref<1x8x32xf32, #tpu.memory_space<vmem>>, vector<1x8x32xf32>
    %5 = vector.shape_cast %4 : vector<1x8x32xf32> to vector<8x32xf32>
    %6 = tpu.transpose %1, [1, 0] : vector<8x32xf32> -> vector<32x8xf32>
    %7 = tpu.transpose %3, [1, 0] : vector<8x32xf32> -> vector<32x8xf32>
    %c0_8 = arith.constant 0 : index
    %c0_9 = arith.constant 0 : index
    %8 = vector.load %arg5[%c0_8, %c0_9] : memref<32x32xf32, #tpu.memory_space<vmem>>, vector<32x32xf32>
    %cst = arith.constant dense<0.000000e+00> : vector<32x8xf32>
    %9 = tpu.matmul %8, %6, %cst {dimension_numbers = #tpu.dot_dimension_numbers<[1], [0], [0], [1], [0, 0, 1, 1], [], []>} : vector<32x32xf32>, vector<32x8xf32>, vector<32x8xf32> -> vector<32x8xf32>
    %c0_10 = arith.constant 0 : index
    %c0_11 = arith.constant 0 : index
    %10 = vector.load %arg6[%c0_10, %c0_11] : memref<32x1xf32, #tpu.memory_space<vmem>>, vector<32x1xf32>
    %11 = vector.broadcast %10 : vector<32x1xf32> to vector<32x8xf32>
    %12 = arith.addf %9, %11 : vector<32x8xf32>
    %c0_12 = arith.constant 0 : index
    %c0_13 = arith.constant 0 : index
    %13 = vector.load %arg7[%c0_12, %c0_13] : memref<64x32xf32, #tpu.memory_space<vmem>>, vector<64x32xf32>
    %cst_14 = arith.constant dense<0.000000e+00> : vector<64x8xf32>
    %14 = tpu.matmul %13, %7, %cst_14 {dimension_numbers = #tpu.dot_dimension_numbers<[1], [0], [0], [1], [0, 0, 1, 1], [], []>} : vector<64x32xf32>, vector<32x8xf32>, vector<64x8xf32> -> vector<64x8xf32>
    %c0_15 = arith.constant 0 : index
    %c0_16 = arith.constant 0 : index
    %15 = vector.load %arg8[%c0_15, %c0_16] : memref<64x1xf32, #tpu.memory_space<vmem>>, vector<64x1xf32>
    %16 = vector.broadcast %15 : vector<64x1xf32> to vector<64x8xf32>
    %17 = arith.addf %14, %16 : vector<64x8xf32>
    %cst_17 = arith.constant 0.353553385 : f32
    %18 = vector.broadcast %cst_17 : f32 to vector<32x8xf32>
    %19 = arith.mulf %12, %18 : vector<32x8xf32>
    %20 = vector.shape_cast %19 : vector<32x8xf32> to vector<4x8x8xf32>
    %21 = tpu.transpose %20, [0, 2, 1] : vector<4x8x8xf32> -> vector<4x8x8xf32>
    %22 = vector.extract_strided_slice %17 {offsets = [0, 0], sizes = [32, 8], strides = [1, 1]} : vector<64x8xf32> to vector<32x8xf32>
    %23 = vector.shape_cast %22 : vector<32x8xf32> to vector<4x8x8xf32>
    %24 = vector.extract_strided_slice %17 {offsets = [32, 0], sizes = [32, 8], strides = [1, 1]} : vector<64x8xf32> to vector<32x8xf32>
    %25 = vector.shape_cast %24 : vector<32x8xf32> to vector<4x8x8xf32>
    "tpu.trace_start"() <{level = 10 : i32, message = "hqd,hdk->hqk"}> : () -> ()
    %cst_18 = arith.constant dense<0.000000e+00> : vector<4x8x8xf32>
    %26 = tpu.matmul %21, %23, %cst_18 {dimension_numbers = #tpu.dot_dimension_numbers<[2], [1], [1], [2], [0, 0, 0, 1, 1, 2], [0], [0]>} : vector<4x8x8xf32>, vector<4x8x8xf32>, vector<4x8x8xf32> -> vector<4x8x8xf32>
    "tpu.trace_stop"() : () -> ()
    %cst_19 = arith.constant dense<0xFF800000> : vector<4x8xf32>
    %27 = vector.multi_reduction <maximumf>, %26, %cst_19 [2] : vector<4x8x8xf32> to vector<4x8xf32>
    %28 = vector.shape_cast %27 : vector<4x8xf32> to vector<4x8x1xf32>
    %29 = vector.broadcast %28 : vector<4x8x1xf32> to vector<4x8x8xf32>
    %30 = arith.subf %26, %29 : vector<4x8x8xf32>
    %31 = math.exp %30 : vector<4x8x8xf32>
    %cst_20 = arith.constant dense<0.000000e+00> : vector<4x8xf32>
    %32 = vector.multi_reduction <add>, %31, %cst_20 [2] : vector<4x8x8xf32> to vector<4x8xf32>
    %33 = vector.shape_cast %32 : vector<4x8xf32> to vector<4x8x1xf32>
    %34 = tpu.reciprocal %33 : vector<4x8x1xf32> -> vector<4x8x1xf32>
    %35 = vector.broadcast %34 : vector<4x8x1xf32> to vector<4x8x8xf32>
    %36 = arith.mulf %31, %35 : vector<4x8x8xf32>
    "tpu.trace_start"() <{level = 10 : i32, message = "hdk,hqk->hdq"}> : () -> ()
    %cst_21 = arith.constant dense<0.000000e+00> : vector<4x8x8xf32>
    %37 = tpu.matmul %25, %36, %cst_21 {dimension_numbers = #tpu.dot_dimension_numbers<[2], [2], [1], [1], [0, 0, 0, 1, 1, 1], [0], [0]>} : vector<4x8x8xf32>, vector<4x8x8xf32>, vector<4x8x8xf32> -> vector<4x8x8xf32>
    "tpu.trace_stop"() : () -> ()
    %38 = vector.shape_cast %37 : vector<4x8x8xf32> to vector<32x8xf32>
    %39 = tpu.transpose %38, [1, 0] : vector<32x8xf32> -> vector<8x32xf32>
    %40 = arith.addf %39, %1 : vector<8x32xf32>
    %c0_22 = arith.constant 0 : index
    %c0_23 = arith.constant 0 : index
    %41 = vector.load %arg9[%c0_22, %c0_23] : memref<2x32xf32, #tpu.memory_space<vmem>>, vector<2x32xf32>
    %cst_24 = arith.constant dense<0.000000e+00> : vector<8xf32>
    %42 = vector.multi_reduction <add>, %40, %cst_24 [1] : vector<8x32xf32> to vector<8xf32>
    %43 = vector.shape_cast %42 : vector<8xf32> to vector<8x1xf32>
    %cst_25 = arith.constant 3.200000e+01 : f32
    %44 = vector.broadcast %cst_25 : f32 to vector<8x1xf32>
    %45 = arith.divf %43, %44 : vector<8x1xf32>
    %46 = vector.broadcast %45 : vector<8x1xf32> to vector<8x32xf32>
    %47 = arith.subf %40, %46 : vector<8x32xf32>
    %48 = arith.mulf %47, %47 : vector<8x32xf32>
    %cst_26 = arith.constant dense<0.000000e+00> : vector<8xf32>
    %49 = vector.multi_reduction <add>, %48, %cst_26 [1] : vector<8x32xf32> to vector<8xf32>
    %50 = vector.shape_cast %49 : vector<8xf32> to vector<8x1xf32>
    %cst_27 = arith.constant 3.200000e+01 : f32
    %51 = vector.broadcast %cst_27 : f32 to vector<8x1xf32>
    %52 = arith.divf %50, %51 : vector<8x1xf32>
    %53 = vector.broadcast %45 : vector<8x1xf32> to vector<8x32xf32>
    %54 = arith.subf %40, %53 : vector<8x32xf32>
    %cst_28 = arith.constant 9.99999974E-6 : f32
    %55 = vector.broadcast %cst_28 : f32 to vector<8x1xf32>
    %56 = arith.addf %52, %55 : vector<8x1xf32>
    %57 = math.rsqrt %56 : vector<8x1xf32>
    %58 = vector.broadcast %57 : vector<8x1xf32> to vector<8x32xf32>
    %59 = arith.mulf %54, %58 : vector<8x32xf32>
    %60 = vector.extract_strided_slice %41 {offsets = [0, 0], sizes = [1, 32], strides = [1, 1]} : vector<2x32xf32> to vector<1x32xf32>
    %61 = vector.shape_cast %60 : vector<1x32xf32> to vector<32xf32>
    %62 = vector.shape_cast %61 : vector<32xf32> to vector<1x32xf32>
    %63 = vector.broadcast %62 : vector<1x32xf32> to vector<8x32xf32>
    %64 = arith.mulf %59, %63 : vector<8x32xf32>
    %65 = vector.extract_strided_slice %41 {offsets = [1, 0], sizes = [1, 32], strides = [1, 1]} : vector<2x32xf32> to vector<1x32xf32>
    %66 = vector.shape_cast %65 : vector<1x32xf32> to vector<32xf32>
    %67 = vector.shape_cast %66 : vector<32xf32> to vector<1x32xf32>
    %68 = vector.broadcast %67 : vector<1x32xf32> to vector<8x32xf32>
    %69 = arith.addf %64, %68 : vector<8x32xf32>
    %70 = tpu.transpose %69, [1, 0] : vector<8x32xf32> -> vector<32x8xf32>
    %71 = tpu.transpose %5, [1, 0] : vector<8x32xf32> -> vector<32x8xf32>
    %c0_29 = arith.constant 0 : index
    %c0_30 = arith.constant 0 : index
    %72 = vector.load %arg10[%c0_29, %c0_30] : memref<32x32xf32, #tpu.memory_space<vmem>>, vector<32x32xf32>
    %cst_31 = arith.constant dense<0.000000e+00> : vector<32x8xf32>
    %73 = tpu.matmul %72, %70, %cst_31 {dimension_numbers = #tpu.dot_dimension_numbers<[1], [0], [0], [1], [0, 0, 1, 1], [], []>} : vector<32x32xf32>, vector<32x8xf32>, vector<32x8xf32> -> vector<32x8xf32>
    %c0_32 = arith.constant 0 : index
    %c0_33 = arith.constant 0 : index
    %74 = vector.load %arg11[%c0_32, %c0_33] : memref<32x1xf32, #tpu.memory_space<vmem>>, vector<32x1xf32>
    %75 = vector.broadcast %74 : vector<32x1xf32> to vector<32x8xf32>
    %76 = arith.addf %73, %75 : vector<32x8xf32>
    %c0_34 = arith.constant 0 : index
    %c0_35 = arith.constant 0 : index
    %77 = vector.load %arg12[%c0_34, %c0_35] : memref<64x32xf32, #tpu.memory_space<vmem>>, vector<64x32xf32>
    %cst_36 = arith.constant dense<0.000000e+00> : vector<64x8xf32>
    %78 = tpu.matmul %77, %71, %cst_36 {dimension_numbers = #tpu.dot_dimension_numbers<[1], [0], [0], [1], [0, 0, 1, 1], [], []>} : vector<64x32xf32>, vector<32x8xf32>, vector<64x8xf32> -> vector<64x8xf32>
    %c0_37 = arith.constant 0 : index
    %c0_38 = arith.constant 0 : index
    %79 = vector.load %arg13[%c0_37, %c0_38] : memref<64x1xf32, #tpu.memory_space<vmem>>, vector<64x1xf32>
    %80 = vector.broadcast %79 : vector<64x1xf32> to vector<64x8xf32>
    %81 = arith.addf %78, %80 : vector<64x8xf32>
    %cst_39 = arith.constant 0.353553385 : f32
    %82 = vector.broadcast %cst_39 : f32 to vector<32x8xf32>
    %83 = arith.mulf %76, %82 : vector<32x8xf32>
    %84 = vector.shape_cast %83 : vector<32x8xf32> to vector<4x8x8xf32>
    %85 = tpu.transpose %84, [0, 2, 1] : vector<4x8x8xf32> -> vector<4x8x8xf32>
    %86 = vector.extract_strided_slice %81 {offsets = [0, 0], sizes = [32, 8], strides = [1, 1]} : vector<64x8xf32> to vector<32x8xf32>
    %87 = vector.shape_cast %86 : vector<32x8xf32> to vector<4x8x8xf32>
    %88 = vector.extract_strided_slice %81 {offsets = [32, 0], sizes = [32, 8], strides = [1, 1]} : vector<64x8xf32> to vector<32x8xf32>
    %89 = vector.shape_cast %88 : vector<32x8xf32> to vector<4x8x8xf32>
    "tpu.trace_start"() <{level = 10 : i32, message = "hqd,hdk->hqk"}> : () -> ()
    %cst_40 = arith.constant dense<0.000000e+00> : vector<4x8x8xf32>
    %90 = tpu.matmul %85, %87, %cst_40 {dimension_numbers = #tpu.dot_dimension_numbers<[2], [1], [1], [2], [0, 0, 0, 1, 1, 2], [0], [0]>} : vector<4x8x8xf32>, vector<4x8x8xf32>, vector<4x8x8xf32> -> vector<4x8x8xf32>
    "tpu.trace_stop"() : () -> ()
    %cst_41 = arith.constant dense<0xFF800000> : vector<4x8xf32>
    %91 = vector.multi_reduction <maximumf>, %90, %cst_41 [2] : vector<4x8x8xf32> to vector<4x8xf32>
    %92 = vector.shape_cast %91 : vector<4x8xf32> to vector<4x8x1xf32>
    %93 = vector.broadcast %92 : vector<4x8x1xf32> to vector<4x8x8xf32>
    %94 = arith.subf %90, %93 : vector<4x8x8xf32>
    %95 = math.exp %94 : vector<4x8x8xf32>
    %cst_42 = arith.constant dense<0.000000e+00> : vector<4x8xf32>
    %96 = vector.multi_reduction <add>, %95, %cst_42 [2] : vector<4x8x8xf32> to vector<4x8xf32>
    %97 = vector.shape_cast %96 : vector<4x8xf32> to vector<4x8x1xf32>
    %98 = tpu.reciprocal %97 : vector<4x8x1xf32> -> vector<4x8x1xf32>
    %99 = vector.broadcast %98 : vector<4x8x1xf32> to vector<4x8x8xf32>
    %100 = arith.mulf %95, %99 : vector<4x8x8xf32>
    "tpu.trace_start"() <{level = 10 : i32, message = "hdk,hqk->hdq"}> : () -> ()
    %cst_43 = arith.constant dense<0.000000e+00> : vector<4x8x8xf32>
    %101 = tpu.matmul %89, %100, %cst_43 {dimension_numbers = #tpu.dot_dimension_numbers<[2], [2], [1], [1], [0, 0, 0, 1, 1, 1], [0], [0]>} : vector<4x8x8xf32>, vector<4x8x8xf32>, vector<4x8x8xf32> -> vector<4x8x8xf32>
    "tpu.trace_stop"() : () -> ()
    %102 = vector.shape_cast %101 : vector<4x8x8xf32> to vector<32x8xf32>
    %103 = tpu.transpose %102, [1, 0] : vector<32x8xf32> -> vector<8x32xf32>
    %104 = arith.addf %103, %69 : vector<8x32xf32>
    %c0_44 = arith.constant 0 : index
    %c0_45 = arith.constant 0 : index
    %105 = vector.load %arg14[%c0_44, %c0_45] : memref<2x32xf32, #tpu.memory_space<vmem>>, vector<2x32xf32>
    %cst_46 = arith.constant dense<0.000000e+00> : vector<8xf32>
    %106 = vector.multi_reduction <add>, %104, %cst_46 [1] : vector<8x32xf32> to vector<8xf32>
    %107 = vector.shape_cast %106 : vector<8xf32> to vector<8x1xf32>
    %cst_47 = arith.constant 3.200000e+01 : f32
    %108 = vector.broadcast %cst_47 : f32 to vector<8x1xf32>
    %109 = arith.divf %107, %108 : vector<8x1xf32>
    %110 = vector.broadcast %109 : vector<8x1xf32> to vector<8x32xf32>
    %111 = arith.subf %104, %110 : vector<8x32xf32>
    %112 = arith.mulf %111, %111 : vector<8x32xf32>
    %cst_48 = arith.constant dense<0.000000e+00> : vector<8xf32>
    %113 = vector.multi_reduction <add>, %112, %cst_48 [1] : vector<8x32xf32> to vector<8xf32>
    %114 = vector.shape_cast %113 : vector<8xf32> to vector<8x1xf32>
    %cst_49 = arith.constant 3.200000e+01 : f32
    %115 = vector.broadcast %cst_49 : f32 to vector<8x1xf32>
    %116 = arith.divf %114, %115 : vector<8x1xf32>
    %117 = vector.broadcast %109 : vector<8x1xf32> to vector<8x32xf32>
    %118 = arith.subf %104, %117 : vector<8x32xf32>
    %cst_50 = arith.constant 9.99999974E-6 : f32
    %119 = vector.broadcast %cst_50 : f32 to vector<8x1xf32>
    %120 = arith.addf %116, %119 : vector<8x1xf32>
    %121 = math.rsqrt %120 : vector<8x1xf32>
    %122 = vector.broadcast %121 : vector<8x1xf32> to vector<8x32xf32>
    %123 = arith.mulf %118, %122 : vector<8x32xf32>
    %124 = vector.extract_strided_slice %105 {offsets = [0, 0], sizes = [1, 32], strides = [1, 1]} : vector<2x32xf32> to vector<1x32xf32>
    %125 = vector.shape_cast %124 : vector<1x32xf32> to vector<32xf32>
    %126 = vector.shape_cast %125 : vector<32xf32> to vector<1x32xf32>
    %127 = vector.broadcast %126 : vector<1x32xf32> to vector<8x32xf32>
    %128 = arith.mulf %123, %127 : vector<8x32xf32>
    %129 = vector.extract_strided_slice %105 {offsets = [1, 0], sizes = [1, 32], strides = [1, 1]} : vector<2x32xf32> to vector<1x32xf32>
    %130 = vector.shape_cast %129 : vector<1x32xf32> to vector<32xf32>
    %131 = vector.shape_cast %130 : vector<32xf32> to vector<1x32xf32>
    %132 = vector.broadcast %131 : vector<1x32xf32> to vector<8x32xf32>
    %133 = arith.addf %128, %132 : vector<8x32xf32>
    %c0_51 = arith.constant 0 : index
    %c0_52 = arith.constant 0 : index
    %134 = vector.load %arg15[%c0_51, %c0_52] : memref<32x64xf32, #tpu.memory_space<vmem>>, vector<32x64xf32>
    %cst_53 = arith.constant dense<0.000000e+00> : vector<8x64xf32>
    %135 = tpu.matmul %133, %134, %cst_53 {dimension_numbers = #tpu.dot_dimension_numbers<[1], [0], [0], [1], [0, 0, 1, 1], [], []>} : vector<8x32xf32>, vector<32x64xf32>, vector<8x64xf32> -> vector<8x64xf32>
    %c0_54 = arith.constant 0 : index
    %c0_55 = arith.constant 0 : index
    %136 = vector.load %arg16[%c0_54, %c0_55] : memref<1x64xf32, #tpu.memory_space<vmem>>, vector<1x64xf32>
    %137 = vector.broadcast %136 : vector<1x64xf32> to vector<8x64xf32>
    %138 = arith.addf %135, %137 : vector<8x64xf32>
    %cst_56 = arith.constant 0.000000e+00 : f32
    %139 = vector.broadcast %cst_56 : f32 to vector<8x64xf32>
    %140 = arith.maximumf %138, %139 : vector<8x64xf32>
    %c0_57 = arith.constant 0 : index
    %c0_58 = arith.constant 0 : index
    %141 = vector.load %arg17[%c0_57, %c0_58] : memref<64x32xf32, #tpu.memory_space<vmem>>, vector<64x32xf32>
    %cst_59 = arith.constant dense<0.000000e+00> : vector<8x32xf32>
    %142 = tpu.matmul %140, %141, %cst_59 {dimension_numbers = #tpu.dot_dimension_numbers<[1], [0], [0], [1], [0, 0, 1, 1], [], []>} : vector<8x64xf32>, vector<64x32xf32>, vector<8x32xf32> -> vector<8x32xf32>
    %c0_60 = arith.constant 0 : index
    %c0_61 = arith.constant 0 : index
    %143 = vector.load %arg18[%c0_60, %c0_61] : memref<1x32xf32, #tpu.memory_space<vmem>>, vector<1x32xf32>
    %144 = vector.broadcast %143 : vector<1x32xf32> to vector<8x32xf32>
    %145 = arith.addf %142, %144 : vector<8x32xf32>
    %146 = arith.addf %145, %133 : vector<8x32xf32>
    %c0_62 = arith.constant 0 : index
    %c0_63 = arith.constant 0 : index
    %147 = vector.load %arg19[%c0_62, %c0_63] : memref<2x32xf32, #tpu.memory_space<vmem>>, vector<2x32xf32>
    %cst_64 = arith.constant dense<0.000000e+00> : vector<8xf32>
    %148 = vector.multi_reduction <add>, %146, %cst_64 [1] : vector<8x32xf32> to vector<8xf32>
    %149 = vector.shape_cast %148 : vector<8xf32> to vector<8x1xf32>
    %cst_65 = arith.constant 3.200000e+01 : f32
    %150 = vector.broadcast %cst_65 : f32 to vector<8x1xf32>
    %151 = arith.divf %149, %150 : vector<8x1xf32>
    %152 = vector.broadcast %151 : vector<8x1xf32> to vector<8x32xf32>
    %153 = arith.subf %146, %152 : vector<8x32xf32>
    %154 = arith.mulf %153, %153 : vector<8x32xf32>
    %cst_66 = arith.constant dense<0.000000e+00> : vector<8xf32>
    %155 = vector.multi_reduction <add>, %154, %cst_66 [1] : vector<8x32xf32> to vector<8xf32>
    %156 = vector.shape_cast %155 : vector<8xf32> to vector<8x1xf32>
    %cst_67 = arith.constant 3.200000e+01 : f32
    %157 = vector.broadcast %cst_67 : f32 to vector<8x1xf32>
    %158 = arith.divf %156, %157 : vector<8x1xf32>
    %159 = vector.broadcast %151 : vector<8x1xf32> to vector<8x32xf32>
    %160 = arith.subf %146, %159 : vector<8x32xf32>
    %cst_68 = arith.constant 9.99999974E-6 : f32
    %161 = vector.broadcast %cst_68 : f32 to vector<8x1xf32>
    %162 = arith.addf %158, %161 : vector<8x1xf32>
    %163 = math.rsqrt %162 : vector<8x1xf32>
    %164 = vector.broadcast %163 : vector<8x1xf32> to vector<8x32xf32>
    %165 = arith.mulf %160, %164 : vector<8x32xf32>
    %166 = vector.extract_strided_slice %147 {offsets = [0, 0], sizes = [1, 32], strides = [1, 1]} : vector<2x32xf32> to vector<1x32xf32>
    %167 = vector.shape_cast %166 : vector<1x32xf32> to vector<32xf32>
    %168 = vector.shape_cast %167 : vector<32xf32> to vector<1x32xf32>
    %169 = vector.broadcast %168 : vector<1x32xf32> to vector<8x32xf32>
    %170 = arith.mulf %165, %169 : vector<8x32xf32>
    %171 = vector.extract_strided_slice %147 {offsets = [1, 0], sizes = [1, 32], strides = [1, 1]} : vector<2x32xf32> to vector<1x32xf32>
    %172 = vector.shape_cast %171 : vector<1x32xf32> to vector<32xf32>
    %173 = vector.shape_cast %172 : vector<32xf32> to vector<1x32xf32>
    %174 = vector.broadcast %173 : vector<1x32xf32> to vector<8x32xf32>
    %175 = arith.addf %170, %174 : vector<8x32xf32>
    %c0_69 = arith.constant 0 : index
    %c0_70 = arith.constant 0 : index
    %c0_71 = arith.constant 0 : index
    %176 = vector.load %arg20[%c0_69, %c0_70, %c0_71] : memref<1x8x32xf32, #tpu.memory_space<vmem>>, vector<1x8x32xf32>
    %177 = vector.shape_cast %176 : vector<1x8x32xf32> to vector<8x32xf32>
    %178 = vector.shape_cast %175 : vector<8x32xf32> to vector<1x8x32xf32>
    tpu.vector_store %arg20[%c0_69, %c0_70, %c0_71], %178 {strides = array<i32>} : memref<1x8x32xf32, #tpu.memory_space<vmem>>, vector<1x8x32xf32>,
    return
  }
  func.func @transform_0(%arg0: i32, %arg1: i32) -> (i32, i32, i32) {
    %c0_i32 = arith.constant 0 : i32
    %c0_i32_0 = arith.constant 0 : i32
    return %arg0, %arg1, %c0_i32 : i32, i32, i32
  }
  func.func @transform_1(%arg0: i32, %arg1: i32) -> (i32, i32, i32) {
    %c0_i32 = arith.constant 0 : i32
    %c0_i32_0 = arith.constant 0 : i32
    %c0_i32_1 = arith.constant 0 : i32
    return %arg0, %c0_i32, %c0_i32_0 : i32, i32, i32
  }
  func.func @transform_2(%arg0: i32, %arg1: i32) -> (i32, i32, i32) {
    %c0_i32 = arith.constant 0 : i32
    %c0_i32_0 = arith.constant 0 : i32
    %c0_i32_1 = arith.constant 0 : i32
    return %arg0, %c0_i32, %c0_i32_0 : i32, i32, i32
  }
  func.func @transform_3(%arg0: i32, %arg1: i32) -> (i32, i32) {
    %c0_i32 = arith.constant 0 : i32
    %c0_i32_0 = arith.constant 0 : i32
    %c0_i32_1 = arith.constant 0 : i32
    return %c0_i32, %c0_i32_0 : i32, i32
  }
  func.func @transform_4(%arg0: i32, %arg1: i32) -> (i32, i32) {
    %c0_i32 = arith.constant 0 : i32
    %c0_i32_0 = arith.constant 0 : i32
    %c0_i32_1 = arith.constant 0 : i32
    return %c0_i32, %c0_i32_0 : i32, i32
  }
  func.func @transform_5(%arg0: i32, %arg1: i32) -> (i32, i32) {
    %c0_i32 = arith.constant 0 : i32
    %c0_i32_0 = arith.constant 0 : i32
    %c0_i32_1 = arith.constant 0 : i32
    return %c0_i32, %c0_i32_0 : i32, i32
  }
  func.func @transform_6(%arg0: i32, %arg1: i32) -> (i32, i32) {
    %c0_i32 = arith.constant 0 : i32
    %c0_i32_0 = arith.constant 0 : i32
    %c0_i32_1 = arith.constant 0 : i32
    return %c0_i32, %c0_i32_0 : i32, i32
  }
  func.func @transform_7(%arg0: i32, %arg1: i32) -> (i32, i32) {
    %c0_i32 = arith.constant 0 : i32
    %c0_i32_0 = arith.constant 0 : i32
    %c0_i32_1 = arith.constant 0 : i32
    return %c0_i32, %c0_i32_0 : i32, i32
  }
  func.func @transform_8(%arg0: i32, %arg1: i32) -> (i32, i32) {
    %c0_i32 = arith.constant 0 : i32
    %c0_i32_0 = arith.constant 0 : i32
    %c0_i32_1 = arith.constant 0 : i32
    return %c0_i32, %c0_i32_0 : i32, i32
  }
  func.func @transform_9(%arg0: i32, %arg1: i32) -> (i32, i32) {
    %c0_i32 = arith.constant 0 : i32
    %c0_i32_0 = arith.constant 0 : i32
    %c0_i32_1 = arith.constant 0 : i32
    return %c0_i32, %c0_i32_0 : i32, i32
  }
  func.func @transform_10(%arg0: i32, %arg1: i32) -> (i32, i32) {
    %c0_i32 = arith.constant 0 : i32
    %c0_i32_0 = arith.constant 0 : i32
    %c0_i32_1 = arith.constant 0 : i32
    return %c0_i32, %c0_i32_0 : i32, i32
  }
  func.func @transform_11(%arg0: i32, %arg1: i32) -> (i32, i32) {
    %c0_i32 = arith.constant 0 : i32
    %c0_i32_0 = arith.constant 0 : i32
    %c0_i32_1 = arith.constant 0 : i32
    return %c0_i32, %c0_i32_0 : i32, i32
  }
  func.func @transform_12(%arg0: i32, %arg1: i32) -> (i32, i32) {
    %c0_i32 = arith.constant 0 : i32
    %c0_i32_0 = arith.constant 0 : i32
    %c0_i32_1 = arith.constant 0 : i32
    return %c0_i32, %c0_i32_0 : i32, i32
  }
  func.func @transform_13(%arg0: i32, %arg1: i32) -> (i32, i32) {
    %c0_i32 = arith.constant 0 : i32
    %c0_i32_0 = arith.constant 0 : i32
    %c0_i32_1 = arith.constant 0 : i32
    return %c0_i32, %c0_i32_0 : i32, i32
  }
  func.func @transform_14(%arg0: i32, %arg1: i32) -> (i32, i32) {
    %c0_i32 = arith.constant 0 : i32
    %c0_i32_0 = arith.constant 0 : i32
    %c0_i32_1 = arith.constant 0 : i32
    return %c0_i32, %c0_i32_0 : i32, i32
  }
  func.func @transform_15(%arg0: i32, %arg1: i32) -> (i32, i32) {
    %c0_i32 = arith.constant 0 : i32
    %c0_i32_0 = arith.constant 0 : i32
    %c0_i32_1 = arith.constant 0 : i32
    return %c0_i32, %c0_i32_0 : i32, i32
  }
  func.func @transform_16(%arg0: i32, %arg1: i32) -> (i32, i32) {
    %c0_i32 = arith.constant 0 : i32
    %c0_i32_0 = arith.constant 0 : i32
    %c0_i32_1 = arith.constant 0 : i32
    return %c0_i32, %c0_i32_0 : i32, i32
  }
  func.func @transform_17(%arg0: i32, %arg1: i32) -> (i32, i32) {
    %c0_i32 = arith.constant 0 : i32
    %c0_i32_0 = arith.constant 0 : i32
    %c0_i32_1 = arith.constant 0 : i32
    return %c0_i32, %c0_i32_0 : i32, i32
  }
  func.func @transform_18(%arg0: i32, %arg1: i32) -> (i32, i32, i32) {
    %c0_i32 = arith.constant 0 : i32
    %c0_i32_0 = arith.constant 0 : i32
    return %arg0, %arg1, %c0_i32 : i32, i32, i32
  }
}

</mosaic_0001>

<bundles_post_ra>
// kernel: tpu_custom_call.1
= control target key start
LH: loop header
LB: loop body
LE: loop exit
PB: predicated region body
PF: predicated region fallthrough
CT: control target
= control target key end

     0   :  { %s4305_s0 = inlined_call_operand.vmem [shape: f32[2,8,32], index: 0, kind: input, shape index: {}]   ;;  %s4306_s1 = inlined_call_operand.vmem [shape: f32[2,8,32], index: 1, kind: input, shape index: {}]   ;;  %s4307_s2 = inlined_call_operand.vmem [shape: f32[2,8,32], index: 2, kind: input, shape index: {}]   ;;  %s4308_s3 = inlined_call_operand.vmem [shape: f32[32,32], index: 3, kind: input, shape index: {}]   ;;  %s4309_s4 = inlined_call_operand.vmem [shape: f32[32,1], index: 4, kind: input, shape index: {}]   ;;  %s4310_s5 = inlined_call_operand.vmem [shape: f32[64,32], index: 5, kind: input, shape index: {}]   ;;  %s4311_s6 = inlined_call_operand.vmem [shape: f32[64,1], index: 6, kind: input, shape index: {}]   ;;  %s4312_s7 = inlined_call_operand.vmem [shape: f32[2,32], index: 7, kind: input, shape index: {}]   ;;  %s4313_s8 = inlined_call_operand.vmem [shape: f32[32,32], index: 8, kind: input, shape index: {}]   ;;  %s4314_s9 = inlined_call_operand.vmem [shape: f32[32,1], index: 9, kind: input, shape index: {}]   ;;  %s4315_s10 = inlined_call_operand.vmem [shape: f32[64,32], index: 10, kind: input, shape index: {}]   ;;  %s4316_s11 = inlined_call_operand.vmem [shape: f32[64,1], index: 11, kind: input, shape index: {}]   ;;  %s4317_s12 = inlined_call_operand.vmem [shape: f32[2,32], index: 12, kind: input, shape index: {}]   ;;  %s4318_s13 = inlined_call_operand.vmem [shape: f32[32,64], index: 13, kind: input, shape index: {}]   ;;  %s4319_s14 = inlined_call_operand.vmem [shape: f32[1,64], index: 14, kind: input, shape index: {}]   ;;  %s4320_s15 = inlined_call_operand.vmem [shape: f32[64,32], index: 15, kind: input, shape index: {}]   ;;  %s4321_s16 = inlined_call_operand.vmem [shape: f32[1,32], index: 16, kind: input, shape index: {}]   ;;  %s4322_s17 = inlined_call_operand.vmem [shape: f32[2,32], index: 17, kind: input, shape index: {}]   ;;  %s4323_s18 = inlined_call_operand.hbm [shape: f32[2,8,32], index: 18, kind: output, shape index: {}]  }
   0x1   :  { %4334 = sst [smem:[#allocation13_spill]] %s4305_s0 }
   0x2   :  { %4335 = sst [smem:[#allocation14_spill]] %s4306_s1 }
   0x3   :  { %4336 = sst [smem:[#allocation15_spill]] %s4307_s2 }
   0x4   :  { %4337 = sst [smem:[#allocation16_spill]] %s4323_s18 }
   0x5   :  { %23 = vsyncpa [#allocation3], 0 }
   0x6   :  { %25 = vsyncpa [#allocation3 + $0x1], 0  ;;  %s3810_s27 = smov 0   ;;  %s3812_s28 = smov 0  }
   0x7   :  { %s3814_s29 = smov 0   ;;  %s3816_s30 = smov 0  }
   0x8   :  { %s3818_s0 = smov 0   ;;  %s3820_s19 = smov 0  }
   0x9 LB: > { %4338 = sst [smem:[#allocation5_spill]] %s3689_s27  ;;  %s3236_s1 = sadd.s32 4294967295, %s3709_s19   ;;  %s3709_s19 = sphi %s3820_s19, %s31_s19   ;;  %s3705_s0 = sphi %s3818_s0, %s4359_s0   ;;  %s3701_s30 = sphi %s3816_s30, %s4358_s30   ;;  %s3697_s29 = sphi %s3814_s29, %s4357_s29   ;;  %s3693_s28 = sphi %s3812_s28, %s4361_s28   ;;  %s3689_s27 = sphi %s3810_s27, %s4360_s27  }
   0xa   : > { %4339 = sst [smem:[#allocation6_spill]] %s3697_s29  ;;  %s3237_s20 = sadd.s32 4294967294, %s3709_s19  }
   0xb   : > { %4340 = sst [smem:[#allocation7_spill]] %s3705_s0  ;;  %s43_s21 = sadd.s32 1, %s3705_s0 }
   0xc   : > { %4341 = sst [smem:[#allocation8_spill]] %s3709_s19  ;;  %s447_s22 = sadd.s32 1, %s3697_s29 }
   0xd   : > { %p45_p0 = scmp.ge.s32.totalorder %s43_s21, 2  ;;  %p457_p1 = scmp.ne.s32.totalorder %s3697_s29, %s3693_s28 }
   0xe   : > { %p458_p2 = scmp.eq.s32.totalorder %s3236_s1, 1  ;;  %p463_p3 = scmp.ne.s32.totalorder %s3693_s28, %s3689_s27 }
   0xf   : > { %s4363_s21 = smov (%p45_p0, %s43_s21), 0  ;;  %p464_p5 = scmp.eq.s32.totalorder %s3237_s20, 1 }
  0x10   : > { %4342 = sst [smem:[#allocation9_spill]] %s4363_s21  ;;  %p3850_p4 = por %p458_p2, %p457_p1 }
  0x11   : > { %s442_s23 = ssub.s32 %s3705_s0, %s4363_s21  ;;  %p3240_p6 = scmp.ge.s32.totalorder %s3709_s19, 1 }
  0x12   : > { %s4343_s2 = scalar_select %p3850_p4, 1, 0 }
  0x13   : > { %p445_p7 = scmp.eq.s32.totalorder %s442_s23, 0  ;;  %p3857_p8 = por %p464_p5, %p463_p3 }
  0x14   : > { %4344 = sst [smem:[#allocation10_spill]] %s4343_s2  ;;  %p551_p9 = scmp.lt.s32.totalorder %s3709_s19, 3 }
  0x15   : > { %s4345_s24 = scalar_select %p3857_p8, 1, 0 }
  0x16   : > { %s3863_s25 = scalar_select %p445_p7, %s3697_s29, %s447_s22  }
  0x17   : > { %4346 = sst [smem:[#allocation11_spill]] %s4345_s24  ;;  %p552_p10 = pnand %p3240_p6, %p551_p9 }
  0x18   : > { %4347 = sst [smem:[#allocation12_spill]] %s3863_s25  ;;  %p615_p11 = scmp.lt.s32.totalorder (!%p552_p10), %s3701_s30, 1 }
  0x19   : > { %555 = sbr.rel (%p552_p10) target bundleno = 3735 (0xe97), region = 92  ;;  %s4348_s29 = sld [smem:[#allocation13_spill]] (!%p552_p10) }
  0x1a   : > { %s4349_s18 = sld [smem:[#allocation14_spill]] (!%p552_p10) }
  0x1b   : > { %s4350_s26 = sld [smem:[#allocation15_spill]] (!%p552_p10) }
  0x1e   : > { %vm661_vm0 = vcmask 261120   ;;  %v633_v0 = vld [vmem:[%s4308_s3] sm:$0xff]  ;;  %v764_v1 = vld [vmem:[%s4310_s5 + $0x10] sm:$0xff]  ;;  %s616_s22 = scalar_select %p615_p11, %s3701_s30, 1  ;;  %v3711_v2 = vmov 0   ;;  %v638_v7 = vld [vmem:[%s4309_s4 + $0x8] sm:$0xff] }
  0x1f   : > { %3381 = vmatprep.mubr.msk.f32.mxu0 %vm661_vm0, %v633_v0  ;;  %3392 = vmatprep.mubr.msk.f32.mxu1 %vm661_vm0, %v764_v1  ;;  %v637_v3 = vld [vmem:[%s4309_s4] sm:$0xff]  ;;  %v639_v4 = vld [vmem:[%s4309_s4 + $0x10] sm:$0xff]  ;;  %v640_v8 = vld [vmem:[%s4309_s4 + $0x18] sm:$0xff]  ;;  %v3712_v19 = vmov 0.0   ;;  %vm3713_vm1 = vmmov 0   ;;  %vm1082_vm2 = vcmask 64512  }
  0x20   : > { %3593 = vset.pattern.permute.xlu0 %v3711_v2  ;;  %3594 = vset.pattern.permute.xlu1 %v3711_v2  ;;  %s3878_s25 = sshll.u32 %s616_s22, 3  ;;  %v634_v9 = vld [vmem:[%s4308_s3 + $0x8] sm:$0xff]  ;;  %v765_v10 = vld [vmem:[%s4310_s5 + $0x18] sm:$0xff]  ;;  %v635_v11 = vld [vmem:[%s4308_s3 + $0x10] sm:$0xff]  ;;  %vm3026_vm3 = vcmask 523264   ;;  %s612_s22 = sand.u32 1, %s3693_s28  }
  0x21   : > { %643 = vperm.xlu0 %3593, %v637_v3   ;;  %s621_s24 = scalar_lea.vmem %s4348_s29, %s3878_s25  ;;  %s625_s2 = scalar_lea.vmem %s4349_s18, %s3878_s25  ;;  %653 = vperm.xlu1 %3594, %v639_v4   ;;  %v770_v12 = vld [vmem:[%s4311_s6] sm:$0xff]  ;;  %v771_v13 = vld [vmem:[%s4311_s6 + $0x8] sm:$0xff]  ;;  %v636_v14 = vld [vmem:[%s4308_s3 + $0x18] sm:$0xff] }
  0x22   : > { %v3891_v5 = vld [vmem:[%s621_s24] sm:$0xff]  ;;  %v772_v16 = vld [vmem:[%s4311_s6 + $0x10] sm:$0xff]  ;;  %v773_v17 = vld [vmem:[%s4311_s6 + $0x18] sm:$0xff]  ;;  %s629_s18 = scalar_lea.vmem %s4350_s26, %s3878_s25  ;;  %s3241_s23 = sshll.u32 %s612_s22, 3 }
  0x23   : > { %v631_v6 = vld [vmem:[%s625_s2] sm:$0xff]  ;;  %3379 = vmatprep.subr.msk.mxu0 %vm661_vm0, %v3891_v5  ;;  %v763_v18 = vld [vmem:[%s4310_s5 + $0x8] sm:$0xff]  ;;  %v768_v37 = vld [vmem:[%s4310_s5 + $0x30] sm:$0xff]  ;;  %s3302_s29 = sshll.u32 %s3701_s30, 7  ;;  %s614_s19 = scalar_lea.vmem [#allocation2], %s3241_s23 }
  0x24   : > { %3533 = vmatprep.subr.msk.mxu1 %vm661_vm0, %v631_v6  ;;  %3380 = vmatpush3.xpose.msk.msra.mxu0 %vm661_vm0, %v3891_v5  ;;  %v762_v15 = vld [vmem:[%s4310_s5] sm:$0xff]  ;;  %v767_v34 = vld [vmem:[%s4310_s5 + $0x28] sm:$0xff]  ;;  %v769_v41 = vld [vmem:[%s4310_s5 + $0x38] sm:$0xff]  ;;  %s3141_s2 = sshll.u32 %s614_s19, 4  ;;  %s4352_s25 = sld [smem:[#allocation16_spill]]  ;;  %s3142_s2 = int_to_ptr.vmem [resolvable:$true] %s3141_s2 }
  0x25   : > { %3534 = vmatpush3.xpose.msk.msra.mxu1 %vm661_vm0, %v631_v6  ;;  %3387 = vmatprep.subr.msk.mxu0 %vm661_vm0, %v631_v6  ;;  %v766_v20 = vld [vmem:[%s4310_s5 + $0x20] sm:$0xff]  ;;  %s3127_s20 = scalar_lea.sflag [#allocation3], %s612_s22  ;;  %s3633_s0 = scalar_lea.vmem %s3142_s2, 128 }
  0x26   : > { %648 = vperm.xlu0 %3593, %v638_v7   ;;  %658 = vperm.xlu1 %3594, %v640_v8   ;;  %p3634_p12 = scmp.ne.s32.totalorder %s3142_s2, %s3633_s0  ;;  %s3714_s26 = smov [#allocation2]  }
  0x27   : > { %3382 = vmatmul.mubr.msk.f32.vlgmr.msra.gmra.mxu0 %vm661_vm0, %v634_v9  ;;  %3416 = vmatprep.subr.mxu1 %v3712_v19  ;;  %v774_v9 = vld [vmem:[%s4311_s6 + $0x20] sm:$0xff] }
  0x28   : > { %3393 = vmatmul.mubr.msk.f32.vlgmr.msra.gmra.mxu1 %vm661_vm0, %v765_v10  ;;  %3384 = vmatprep.mubr.msk.f32.mxu0 %vm661_vm0, %v635_v11  ;;  %p3635_p13 = pnand %p3634_p12, %p3850_p4 }
  0x29   : > { %3388 = vmatpush3.xpose.msk.msra.mxu0 %vm661_vm0, %v631_v6  ;;  %3395 = vmatprep.mubr.msk.f32.mxu1 %vm661_vm0, %v766_v20 }
  0x2a   : > { %780 = vperm.xlu0 %3593, %v770_v12   ;;  %785 = vperm.xlu1 %3594, %v771_v13   ;;  %s3139_s21 = scalar_lea.hbm %s4352_s25, %s3302_s29  ;;  %p3636_p0 = pneg %p3635_p13 }
  0x2b   : > { %3385 = vmatmul.mubr.msk.f32.gmra.mxu0 %vm661_vm0, %v636_v14  ;;  %3401 = vmatprep.subr.mxu0 %v3712_v19 }
  0x2c   : > { %3389 = vmatprep.mubr.msk.f32.mxu0 %vm661_vm0, %v762_v15  ;;  %3396 = vmatmul.mubr.msk.f32.gmra.mxu1 %vm661_vm0, %v767_v34 }
  0x2d   : > { %3398 = vmatprep.mubr.msk.f32.mxu1 %vm661_vm0, %v768_v37 }
  0x2e   : > { %790 = vperm.xlu0 %3593, %v772_v16   ;;  %795 = vperm.xlu1 %3594, %v773_v17  }
  0x2f   : > { %3390 = vmatmul.mubr.msk.f32.vlgmr.msra.gmra.mxu0 %vm661_vm0, %v763_v18 }
  0x30   : > { %3403 = vmatprep.mubr.msk.f32.mxu0 %vm3713_vm1, %v3712_v19  ;;  %3399 = vmatmul.mubr.msk.f32.gmra.mxu1 %vm661_vm0, %v769_v41 }
  0x31   : > { %3418 = vmatprep.mubr.msk.f32.mxu1 %vm3713_vm1, %v3712_v19 }
  0x9c   : > { %v654_v21 = vpop.permute.xlu1 %653  ;;  %v644_v24 = vpop.permute.xlu0 %643 }
  0xa1   : > { %v659_v22 = vpop.permute.xlu1 %658  ;;  %v649_v26 = vpop.permute.xlu0 %648 }
  0xa5   : > { %v786_v23 = vpop.permute.xlu1 %785  ;;  %v781_v44 = vpop.permute.xlu0 %780 }
  0xa9   : > { %v796_v25 = vpop.permute.xlu1 %795  ;;  %v791_v48 = vpop.permute.xlu0 %790 }
  0xe7   : > { %v3383_v27 = vpop.f32.mrf.mxu0 }
  0xe8   : > { %v3394_v28 = vpop.f32.mrf.mxu1  ;;  %v749_v29 = vadd.f32 %v3383_v27, %v649_v26  ;;  %v776_v26 = vld [vmem:[%s4311_s6 + $0x30] sm:$0xff] }
  0xe9   : > { %v927_v30 = vadd.f32 %v3394_v28, %v796_v25  ;;  %v743_v31 = vpop.f32.mrf.mxu0 }
  0xea   : > { %v951_v32 = vmul.f32 0.35355338, %v749_v29  ;;  %v744_v33 = vadd.f32 %v743_v31, %v644_v24  ;;  %v921_v51 = vpop.f32.mrf.mxu1 }
  0xeb   : > { %3417 = vmatpush3.msra.mxu1 %v927_v30  ;;  %v3386_v35 = vpop.f32.mrf.mxu0  ;;  %v922_v53 = vadd.f32 %v921_v51, %v791_v48  ;;  %v775_v30 = vld [vmem:[%s4311_s6 + $0x28] sm:$0xff] }
  0xec   : > { %3426 = vmatprep.subr.mxu1 %v3712_v19  ;;  %v950_v36 = vmul.f32 0.35355338, %v744_v33  ;;  %986 = vxpose.xlu1.b32.start.end [1/1] (short) (narrow) %v951_v32, 8  ;;  %v759_v40 = vadd.f32 %v3386_v35, %v659_v22  ;;  %v3981_v56 = vpop.f32.mrf.mxu1  ;;  %v777_v33 = vld [vmem:[%s4311_s6 + $0x38] sm:$0xff] }
  0xed   : > { %v753_v38 = vpop.f32.mrf.mxu0 }
  0xee   : > { %v754_v39 = vadd.f32 %v753_v38, %v654_v21  ;;  %954 = vxpose.xlu0.b32.start.end [1/1] (short) (narrow) %v950_v36, 8  ;;  %v953_v46 = vmul.f32 0.35355338, %v759_v40  ;;  %v3983_v57 = vpop.f32.mrf.mxu1 }
  0xef   : > { %v3391_v42 = vpop.f32.mrf.mxu0 }
  0xf0   : > { %v952_v43 = vmul.f32 0.35355338, %v754_v39  ;;  %v917_v49 = vadd.f32 %v3391_v42, %v786_v23  ;;  %v3985_v59 = vpop.f32.mrf.mxu1 }
  0xf1   : > { %v911_v45 = vpop.f32.mrf.mxu0 }
  0xf2   : > { %v912_v47 = vadd.f32 %v911_v45, %v781_v44  ;;  %1018 = vxpose.xlu0.b32.start.end [1/1] (short) (narrow) %v952_v43, 8  ;;  %v3988_v63 = vpop.f32.mrf.mxu1 }
  0xf4   : > { %3402 = vmatpush3.msra.mxu0 %v912_v47 }
  0xf5   : > { %3406 = vmatprep.subr.mxu0 %v3712_v19 }
  0xf6   : > { %1050 = vxpose.xlu0.b32.start.end [1/1] (short) (narrow) %v953_v46, 8 }
 0x168   : > { %v1002_v52 = vpop.trf.xlu1 }
 0x16a   : > { %v970_v50 = vpop.trf.xlu0 }
 0x16b   : > { %3404 = vmatmul.mubr.msk.f32.vlgmr.msra.gmra.mxu0 %vm1082_vm2, %v970_v50 }
 0x16c   : > { %3407 = vmatpush3.msra.mxu0 %v917_v49  ;;  %3408 = vmatprep.mubr.msk.f32.mxu0 %vm3713_vm1, %v3712_v19 }
 0x16d   : > { %3411 = vmatprep.subr.mxu0 %v3712_v19 }
 0x16e   : > { %v1034_v54 = vpop.trf.xlu0 }
 0x16f   : > { %3409 = vmatmul.mubr.msk.f32.vlgmr.msra.gmra.mxu0 %vm1082_vm2, %v1002_v52 }
 0x170   : > { %3412 = vmatpush3.msra.mxu0 %v922_v53  ;;  %3413 = vmatprep.mubr.msk.f32.mxu0 %vm3713_vm1, %v3712_v19 }
 0x171   : > { %3421 = vmatprep.subr.mxu0 %v3712_v19 }
 0x172   : > { %v1066_v55 = vpop.trf.xlu0 }
 0x173   : > { %3414 = vmatmul.mubr.msk.f32.vlgmr.msra.gmra.mxu0 %vm1082_vm2, %v1034_v54  ;;  %3419 = vmatmul.mubr.msk.f32.vlgmr.msra.gmra.mxu1 %vm1082_vm2, %v1066_v55 }
 0x174   : > { %3423 = vmatprep.mubr.msk.f32.mxu0 %vm3713_vm1, %v3712_v19  ;;  %3428 = vmatprep.mubr.msk.f32.mxu1 %vm3713_vm1, %v3712_v19 }
 0x22b   : > { %v1152_v58 = vpop.f32.mrf.mxu0 }
 0x22c   : > { %v1375_v60 = vsel %vm1082_vm2, %v1152_v58, -inf }
 0x22d   : > { %1376 = vmax.xlane.f32.xlu0 %v1375_v60  ;;  %v3405_v61 = vpop.f32.mrf.mxu0 }
 0x22f   : > { %v1225_v62 = vpop.f32.mrf.mxu0 }
 0x230   : > { %v1378_v0 = vsel %vm1082_vm2, %v1225_v62, -inf }
 0x231   : > { %1379 = vmax.xlane.f32.xlu1 %v1378_v0  ;;  %v3410_v1 = vpop.f32.mrf.mxu0  ;;  %v1786_v0 = vld [vmem:[%s4314_s9 + $0x8] sm:$0xff] }
 0x232   : > { %v1910_v1 = vld [vmem:[%s4315_s10 + $0x8] sm:$0xff] }
 0x233   : > { %v1298_v2 = vpop.f32.mrf.mxu0  ;;  %v1371_v3 = vpop.f32.mrf.mxu1 }
 0x234   : > { %v1381_v4 = vsel %vm1082_vm2, %v1298_v2, -inf  ;;  %v1384_v6 = vsel %vm1082_vm2, %v1371_v3, -inf }
 0x235   : > { %1382 = vmax.xlane.f32.xlu1 %v1381_v4  ;;  %1385 = vmax.xlane.f32.xlu0 %v1384_v6  ;;  %v3415_v7 = vpop.f32.mrf.mxu0  ;;  %v3420_v8 = vpop.f32.mrf.mxu1 }
 0x246   : > { %800 = vperm.xlu1 %3594, %v774_v9  }
 0x2b6   : > { %v1377_v10 = vpop.xlane.xlu0 %1376 }
 0x2b7   : > { %v1387_v11 = vsub.f32 %v1152_v58, %v1377_v10 }
 0x2b9   : > { %v1391_v12 = vmul.f32 1.442695, %v1387_v11 }
 0x2ba   : > { %v1380_v13 = vpop.xlane.xlu1 %1379 }
 0x2bb   : > { %3595 = vpow2.f32 %v1391_v12  ;;  %v1388_v14 = vsub.f32 %v1225_v62, %v1380_v13  ;;  %v1909_v62 = vld [vmem:[%s4315_s10] sm:$0xff] }
 0x2bc   : > { %v1785_v13 = vld [vmem:[%s4314_s9] sm:$0xff] }
 0x2bd   : > { %v1393_v18 = vmul.f32 1.442695, %v1388_v14  ;;  %v1787_v14 = vld [vmem:[%s4314_s9 + $0x10] sm:$0xff] }
 0x2be   : > { %v1386_v15 = vpop.xlane.xlu0 %1385  ;;  %v1383_v27 = vpop.xlane.xlu1 %1382 }
 0x2bf   : > { %v1390_v16 = vsub.f32 %v1371_v3, %v1386_v15  ;;  %v1389_v28 = vsub.f32 %v1298_v2, %v1383_v27  ;;  %v1911_v2 = vld [vmem:[%s4315_s10 + $0x10] sm:$0xff]  ;;  %v1912_v3 = vld [vmem:[%s4315_s10 + $0x18] sm:$0xff]  ;;  %v1917_v15 = vld [vmem:[%s4316_s11] sm:$0xff] }
 0x2c1   : > { %v1397_v17 = vmul.f32 1.442695, %v1390_v16  ;;  %v1395_v29 = vmul.f32 1.442695, %v1389_v28  ;;  %v1918_v16 = vld [vmem:[%s4316_s11 + $0x8] sm:$0xff] }
 0x2c2   : > { %v801_v34 = vpop.permute.xlu1 %800 }
 0x2c3   : > { %3597 = vpow2.f32 %v1397_v17  ;;  %v932_v40 = vadd.f32 %v3983_v57, %v801_v34  ;;  %v1919_v17 = vld [vmem:[%s4316_s11 + $0x10] sm:$0xff] }
 0x2c4   : > { %3599 = vpow2.f32 %v1393_v18  ;;  %v1781_v18 = vld [vmem:[%s4313_s8] sm:$0xff] }
 0x2c5   : > { %3601 = vpow2.f32 %v1395_v29 }
 0x2c8   : > { %v3596_v20 = vpop.eup %3595 }
 0x2c9   : > { %v1399_v21 = vsel %vm1082_vm2, %v3596_v20, 0.0 }
 0x2ca   : > { %1400 = vadd.xlane.f32.xlu1 %v1399_v21 }
 0x2d0   : > { %v3598_v22 = vpop.eup %3597 }
 0x2d1   : > { %v1408_v23 = vsel %vm1082_vm2, %v3598_v22, 0.0  ;;  %v3600_v24 = vpop.eup %3599 }
 0x2d2   : > { %1409 = vadd.xlane.f32.xlu0 %v1408_v23  ;;  %v1402_v25 = vsel %vm1082_vm2, %v3600_v24, 0.0  ;;  %v3602_v31 = vpop.eup %3601 }
 0x2d3   : > { %v1405_v32 = vsel %vm1082_vm2, %v3602_v31, 0.0 }
 0x2d6   : > { %1403 = vadd.xlane.f32.xlu0 %v1402_v25  ;;  %v1771_v25 = vlaneseq }
 0x2d8   : > { %v1772_v27 = vshrl.u32 %v1771_v25, 7 }
 0x2da   : > { %v4081_v29 = vsub.s32 0, %v1772_v27 }
 0x2db   : > { %810 = vperm.xlu1 %3594, %v776_v26  }
 0x2ec   : > { %805 = vperm.xlu0 %3593, %v775_v30   ;;  %v1756_v30 = vld [vmem:[%s4312_s7] sm:$0x3] }
 0x2ff   : > { %1406 = vadd.xlane.f32.xlu1 %v1405_v32 }
 0x310   : > { %815 = vperm.xlu1 %3594, %v777_v33   ;;  %v1774_v33 = vrot.slane %v1756_v30, %v4081_v29 }
 0x353   : > { %v1401_v35 = vpop.xlane.xlu1 %1400 }
 0x354   : > { %3603 = vrcp.f32 %v1401_v35 }
 0x357   : > { %v811_v47 = vpop.permute.xlu1 %810 }
 0x358   : > { %v942_v53 = vadd.f32 %v3988_v63, %v811_v47  ;;  %v632_v63 = vld [vmem:[%s629_s18] sm:$0xff]  ;;  %s3637_s18 = sshll.u32 %s3714_s26, 4  ;;  %s3638_s18 = int_to_ptr.vmem [resolvable:$false] %s3637_s18 }
 0x359   : > { %s3639_s30 = scalar_lea.vmem %s3638_s18, 256  ;;  %p3640_p1 = scmp.lt.s32.totalorder %s3142_s2, %s3638_s18 }
 0x35a   : > { %p3641_p2 = scmp.lt.s32.totalorder %s3639_s30, %s3633_s0 }
 0x35b   : > { %v1410_v36 = vpop.xlane.xlu0 %1409 }
 0x35c   : > { %p3642_p3 = por %p3641_p2, %p3640_p1 }
 0x35e   : > { %p3643_p5 = pnand %p3642_p3, %p3636_p0 }
 0x35f   : > { %v1404_v37 = vpop.xlane.xlu0 %1403 }
 0x360   : > { %3605 = vrcp.f32 %v1404_v37 }
 0x361   : > { %v3604_v38 = vpop.eup %3603  ;;  %3607 = vrcp.f32 %v1410_v36 }
 0x362   : > { %v1415_v39 = vmul.f32 %v3604_v38, %v3596_v20  ;;  %v1920_v20 = vld [vmem:[%s4316_s11 + $0x18] sm:$0xff] }
 0x364   : > { %3422 = vmatpush3.xpose.msk.msra.mxu0 %vm1082_vm2, %v1415_v39 }
 0x365   : > { %3431 = vmatprep.subr.mxu0 %v3712_v19 }
 0x367   : > { %3424 = vmatmul.mubr.msk.f32.vlgmr.msra.gmra.mxu0 %vm1082_vm2, %v932_v40  ;;  %v806_v42 = vpop.permute.xlu0 %805 }
 0x368   : > { %3433 = vmatprep.mubr.msk.f32.mxu0 %vm3713_vm1, %v3712_v19  ;;  %v937_v45 = vadd.f32 %v3981_v56, %v806_v42 }
 0x36d   : > { %v3606_v41 = vpop.eup %3605 }
 0x36e   : > { %v1416_v43 = vmul.f32 %v3606_v41, %v3600_v24  ;;  %v3608_v44 = vpop.eup %3607 }
 0x36f   : > { %v1418_v46 = vmul.f32 %v3608_v44, %v3598_v22  ;;  %v1783_v44 = vld [vmem:[%s4313_s8 + $0x10] sm:$0xff] }
 0x370   : > { %3427 = vmatpush3.xpose.msk.msra.mxu1 %vm1082_vm2, %v1416_v43  ;;  %v1782_v43 = vld [vmem:[%s4313_s8 + $0x8] sm:$0xff] }
 0x371   : > { %3436 = vmatprep.subr.mxu1 %v3712_v19 }
 0x373   : > { %3429 = vmatmul.mubr.msk.f32.vlgmr.msra.gmra.mxu1 %vm1082_vm2, %v937_v45 }
 0x374   : > { %3437 = vmatpush3.xpose.msk.msra.mxu1 %vm1082_vm2, %v1418_v46  ;;  %3438 = vmatprep.mubr.msk.f32.mxu1 %vm3713_vm1, %v3712_v19 }
 0x375   : > { %3449 = vmatprep.subr.msk.mxu1 %vm661_vm0, %v632_v63 }
 0x388   : > { %v1407_v48 = vpop.xlane.xlu1 %1406 }
 0x389   : > { %3609 = vrcp.f32 %v1407_v48 }
 0x38c   : > { %v816_v49 = vpop.permute.xlu1 %815 }
 0x38d   : > { %v947_v50 = vadd.f32 %v3985_v59, %v816_v49  ;;  %v1784_v49 = vld [vmem:[%s4313_s8 + $0x18] sm:$0xff] }
 0x38f   : > { %3439 = vmatmul.mubr.msk.f32.vlgmr.msra.gmra.mxu1 %vm1082_vm2, %v947_v50 }
 0x390   : > { %3451 = vmatprep.mubr.msk.f32.mxu1 %vm661_vm0, %v1909_v62  ;;  %3450 = vmatpush3.xpose.msk.msra.mxu1 %vm661_vm0, %v632_v63 }
 0x391   : > { %3478 = vmatprep.subr.mxu1 %v3712_v19 }
 0x393   : > { %3452 = vmatmul.mubr.msk.f32.vlgmr.msra.gmra.mxu1 %vm661_vm0, %v1910_v1  ;;  %v1916_v1 = vld [vmem:[%s4315_s10 + $0x38] sm:$0xff] }
 0x394   : > { %3454 = vmatprep.mubr.msk.f32.mxu1 %vm661_vm0, %v1911_v2 }
 0x396   : > { %v3610_v51 = vpop.eup %3609 }
 0x397   : > { %v1417_v52 = vmul.f32 %v3610_v51, %v3602_v31  ;;  %3455 = vmatmul.mubr.msk.f32.gmra.mxu1 %vm661_vm0, %v1912_v3  ;;  %v4086_v31 = vsub.s32 1, %v1772_v27  ;;  %v1921_v27 = vld [vmem:[%s4316_s11 + $0x20] sm:$0xff] }
 0x399   : > { %3432 = vmatpush3.xpose.msk.msra.mxu0 %vm1082_vm2, %v1417_v52  ;;  %v1779_v36 = vrot.slane %v1756_v30, %v4086_v31 }
 0x39c   : > { %3434 = vmatmul.mubr.msk.f32.vlgmr.msra.gmra.mxu0 %vm1082_vm2, %v942_v53 }
 0x39d   : > { %3443 = vmatprep.mubr.msk.f32.mxu0 %vm661_vm0, %v1781_v18 }
 0x427   : > { %v1491_v54 = vpop.f32.mrf.mxu0 }
 0x428   : > { %1723 = vxpose.xlu0.b32.start [1/4] (short) (narrow) %v1491_v54, 8 }
 0x429   : > { %v3425_v55 = vpop.f32.mrf.mxu0 }
 0x433   : > { %v1567_v56 = vpop.f32.mrf.mxu1 }
 0x434   : > { %1724 = vxpose.xlu0.b32.cont [2/4] (short) (narrow) %v1567_v56, 8 }
 0x435   : > { %v3430_v57 = vpop.f32.mrf.mxu1 }
 0x44f   : > { %v1719_v58 = vpop.f32.mrf.mxu1 }
 0x451   : > { %v3440_v60 = vpop.f32.mrf.mxu1 }
 0x452   : > { %v1914_v60 = vld [vmem:[%s4315_s10 + $0x28] sm:$0xff] }
 0x453   : > { %v3453_v38 = vpop.f32.mrf.mxu1 }
 0x455   : > { %v2058_v42 = vpop.f32.mrf.mxu1 }
 0x457   : > { %v3456_v46 = vpop.f32.mrf.mxu1 }
 0x45c   : > { %v1643_v59 = vpop.f32.mrf.mxu0 }
 0x45d   : > { %1725 = vxpose.xlu0.b32.cont [3/4] (short) (narrow) %v1643_v59, 8 }
 0x45e   : > { %v3435_v61 = vpop.f32.mrf.mxu0 }
 0x461   : > { %1726 = vxpose.xlu0.b32.end [4/4] (short) (narrow) %v1719_v58, 8  ;;  %v1913_v58 = vld [vmem:[%s4315_s10 + $0x20] sm:$0xff] }
 0x462   : > { %3457 = vmatprep.mubr.msk.f32.mxu1 %vm661_vm0, %v1913_v58 }
 0x463   : > { %3458 = vmatmul.mubr.msk.f32.gmra.mxu1 %vm661_vm0, %v1914_v60 }
 0x48a   : > { %1796 = vperm.xlu0 %3593, %v1786_v0   ;;  %v1915_v0 = vld [vmem:[%s4315_s10 + $0x30] sm:$0xff] }
 0x48b   : > { %3460 = vmatprep.mubr.msk.f32.mxu1 %vm661_vm0, %v1915_v0 }
 0x48c   : > { %3461 = vmatmul.mubr.msk.f32.gmra.mxu1 %vm661_vm0, %v1916_v1 }
 0x48d   : > { %3480 = vmatprep.mubr.msk.f32.mxu1 %vm3713_vm1, %v3712_v19 }
 0x4d1   : > { %v1739_v4 = vpop.trf.xlu0 }
 0x4d2   : > { %v1755_v6 = vadd.f32 %v1739_v4, %v3891_v5  ;;  %v1788_v5 = vld [vmem:[%s4314_s9 + $0x18] sm:$0xff] }
 0x4d4   : > { %v1757_v7 = vsel %vm661_vm0, %v1755_v6, 0.0 }
 0x4d5   : > { %1758 = vadd.xlane.f32.xlu1 %v1757_v7  ;;  %v2068_v7 = vpop.f32.mrf.mxu1 }
 0x505   : > { %v1797_v50 = vpop.permute.xlu0 %1796 }
 0x55e   : > { %v1759_v8 = vpop.xlane.xlu1 %1758 }
 0x55f   : > { %v1761_v9 = vmul.f32 0.03125, %v1759_v8 }
 0x561   : > { %v1762_v10 = vsub.f32 %v1755_v6, %v1761_v9 }
 0x563   : > { %v1763_v11 = vmul.f32 %v1762_v10, %v1762_v10 }
 0x565   : > { %v1764_v12 = vsel %vm661_vm0, %v1763_v11, 0.0  ;;  %v4145_v11 = vpop.f32.mrf.mxu1 }
 0x566   : > { %1765 = vadd.xlane.f32.xlu1 %v1764_v12 }
 0x567   : > { %v4147_v12 = vpop.f32.mrf.mxu1 }
 0x577   : > { %1791 = vperm.xlu1 %3594, %v1785_v13  }
 0x57b   : > { %1801 = vperm.xlu1 %3594, %v1787_v14   ;;  %v4149_v14 = vpop.f32.mrf.mxu1 }
 0x57f   : > { %1806 = vperm.xlu1 %3594, %v1788_v5  }
 0x583   : > { %1927 = vperm.xlu1 %3594, %v1917_v15  }
 0x587   : > { %1932 = vperm.xlu1 %3594, %v1918_v16  }
 0x58b   : > { %1937 = vperm.xlu1 %3594, %v1919_v17   ;;  %v4152_v17 = vpop.f32.mrf.mxu1 }
 0x58f   : > { %1942 = vperm.xlu1 %3594, %v1920_v20  }
 0x5ef   : > { %v1766_v21 = vpop.xlane.xlu1 %1765 }
 0x5f0   : > { %v1767_v22 = vmul.f32 0.03125, %v1766_v21 }
 0x5f2   : > { %v1768_v23 = vadd.f32 1e-05, %v1767_v22 }
 0x5f3   : > { %v1792_v24 = vpop.permute.xlu1 %1791 }
 0x5f4   : > { %3611 = vrsqrt.f32 %v1768_v23 }
 0x5f7   : > { %v1802_v26 = vpop.permute.xlu1 %1801 }
 0x5fb   : > { %v1807_v28 = vpop.permute.xlu1 %1806 }
 0x5ff   : > { %v1928_v32 = vpop.permute.xlu1 %1927 }
 0x600   : > { %v2059_v45 = vadd.f32 %v2058_v42, %v1928_v32 }
 0x601   : > { %v3612_v34 = vpop.eup %3611 }
 0x602   : > { %v1770_v35 = vmul.f32 %v3612_v34, %v1762_v10 }
 0x603   : > { %v1933_v37 = vpop.permute.xlu1 %1932 }
 0x604   : > { %v1775_v39 = vmul.f32 %v1774_v33, %v1770_v35  ;;  %v2064_v4 = vadd.f32 %v3453_v38, %v1933_v37 }
 0x606   : > { %v4090_v40 = vadd.f32 %v1779_v36, %v1775_v39 }
 0x607   : > { %v1938_v41 = vpop.permute.xlu1 %1937 }
 0x608   : > { %3441 = vmatprep.subr.msk.mxu0 %vm661_vm0, %v4090_v40  ;;  %v2069_v8 = vadd.f32 %v2068_v7, %v1938_v41 }
 0x609   : > { %3442 = vmatpush3.xpose.msk.msra.mxu0 %vm661_vm0, %v4090_v40 }
 0x60a   : > { %3463 = vmatprep.subr.mxu0 %v3712_v19 }
 0x60b   : > { %v1943_v47 = vpop.permute.xlu1 %1942 }
 0x60c   : > { %v2074_v48 = vadd.f32 %v3456_v46, %v1943_v47  ;;  %3444 = vmatmul.mubr.msk.f32.vlgmr.msra.gmra.mxu0 %vm661_vm0, %v1782_v43 }
 0x60d   : > { %3464 = vmatpush3.msra.mxu0 %v2059_v45  ;;  %3446 = vmatprep.mubr.msk.f32.mxu0 %vm661_vm0, %v1783_v44 }
 0x60e   : > { %3479 = vmatpush3.msra.mxu1 %v2074_v48  ;;  %3468 = vmatprep.subr.mxu0 %v3712_v19 }
 0x60f   : > { %3488 = vmatprep.subr.mxu1 %v3712_v19 }
 0x610   : > { %3447 = vmatmul.mubr.msk.f32.gmra.mxu0 %vm661_vm0, %v1784_v49 }
 0x611   : > { %3465 = vmatprep.mubr.msk.f32.mxu0 %vm3713_vm1, %v3712_v19 }
 0x6cc   : > { %v3445_v51 = vpop.f32.mrf.mxu0 }
 0x6cd   : > { %v1896_v52 = vadd.f32 %v3445_v51, %v1797_v50 }
 0x6ce   : > { %v1890_v53 = vpop.f32.mrf.mxu0 }
 0x6cf   : > { %v2098_v54 = vmul.f32 0.35355338, %v1896_v52  ;;  %v1891_v55 = vadd.f32 %v1890_v53, %v1792_v24  ;;  %v1924_v52 = vld [vmem:[%s4316_s11 + $0x38] sm:$0xff]  ;;  %v1923_v53 = vld [vmem:[%s4316_s11 + $0x30] sm:$0xff] }
 0x6d0   : > { %v3448_v56 = vpop.f32.mrf.mxu0 }
 0x6d1   : > { %v2097_v57 = vmul.f32 0.35355338, %v1891_v55  ;;  %2133 = vxpose.xlu0.b32.start.end [1/1] (short) (narrow) %v2098_v54, 8  ;;  %v1906_v62 = vadd.f32 %v3448_v56, %v1807_v28  ;;  %v1922_v28 = vld [vmem:[%s4316_s11 + $0x28] sm:$0xff] }
 0x6d2   : > { %v1900_v59 = vpop.f32.mrf.mxu0 }
 0x6d3   : > { %v1901_v61 = vadd.f32 %v1900_v59, %v1802_v26  ;;  %2101 = vxpose.xlu1.b32.start.end [1/1] (short) (narrow) %v2097_v57, 8  ;;  %v2100_v2 = vmul.f32 0.35355338, %v1906_v62 }
 0x6d5   : > { %v2099_v63 = vmul.f32 0.35355338, %v1901_v61 }
 0x6d7   : > { %2165 = vxpose.xlu0.b32.start.end [1/1] (short) (narrow) %v2099_v63, 8 }
 0x6db   : > { %2197 = vxpose.xlu0.b32.start.end [1/1] (short) (narrow) %v2100_v2, 8 }
 0x74d   : > { %v2149_v3 = vpop.trf.xlu0 }
 0x74f   : > { %v2117_v6 = vpop.trf.xlu1 }
 0x750   : > { %3466 = vmatmul.mubr.msk.f32.vlgmr.msra.gmra.mxu0 %vm1082_vm2, %v2117_v6 }
 0x751   : > { %3469 = vmatpush3.msra.mxu0 %v2064_v4  ;;  %3470 = vmatprep.mubr.msk.f32.mxu0 %vm3713_vm1, %v3712_v19 }
 0x752   : > { %3473 = vmatprep.subr.mxu0 %v3712_v19 }
 0x753   : > { %v2181_v9 = vpop.trf.xlu0 }
 0x754   : > { %3471 = vmatmul.mubr.msk.f32.vlgmr.msra.gmra.mxu0 %vm1082_vm2, %v2149_v3 }
 0x755   : > { %3474 = vmatpush3.msra.mxu0 %v2069_v8  ;;  %3475 = vmatprep.mubr.msk.f32.mxu0 %vm3713_vm1, %v3712_v19 }
 0x756   : > { %3483 = vmatprep.subr.mxu0 %v3712_v19 }
 0x757   : > { %v2213_v10 = vpop.trf.xlu0 }
 0x758   : > { %3476 = vmatmul.mubr.msk.f32.vlgmr.msra.gmra.mxu0 %vm1082_vm2, %v2181_v9  ;;  %3481 = vmatmul.mubr.msk.f32.vlgmr.msra.gmra.mxu1 %vm1082_vm2, %v2213_v10 }
 0x759   : > { %3485 = vmatprep.mubr.msk.f32.mxu0 %vm3713_vm1, %v3712_v19  ;;  %3490 = vmatprep.mubr.msk.f32.mxu1 %vm3713_vm1, %v3712_v19 }
 0x810   : > { %v2298_v13 = vpop.f32.mrf.mxu0 }
 0x811   : > { %v2521_v5 = vsel %vm1082_vm2, %v2298_v13, -inf }
 0x812   : > { %2522 = vmax.xlane.f32.xlu0 %v2521_v5  ;;  %v3467_v15 = vpop.f32.mrf.mxu0 }
 0x814   : > { %v2371_v16 = vpop.f32.mrf.mxu0 }
 0x815   : > { %v2524_v18 = vsel %vm1082_vm2, %v2371_v16, -inf }
 0x816   : > { %2525 = vmax.xlane.f32.xlu1 %v2524_v18  ;;  %v3472_v20 = vpop.f32.mrf.mxu0 }
 0x818   : > { %v2444_v21 = vpop.f32.mrf.mxu0  ;;  %v2517_v22 = vpop.f32.mrf.mxu1 }
 0x819   : > { %v2527_v23 = vsel %vm1082_vm2, %v2444_v21, -inf  ;;  %v2530_v26 = vsel %vm1082_vm2, %v2517_v22, -inf }
 0x81a   : > { %2528 = vmax.xlane.f32.xlu1 %v2527_v23  ;;  %v3477_v24 = vpop.f32.mrf.mxu0  ;;  %v3482_v25 = vpop.f32.mrf.mxu1 }
 0x81e   : > { %2531 = vmax.xlane.f32.xlu1 %v2530_v26 }
 0x828   : > { %1947 = vperm.xlu0 %3593, %v1921_v27   ;;  %v2929_v27 = vld [vmem:[%s4318_s13 + $0x18] sm:$0xff] }
 0x82f   : > { %1952 = vperm.xlu1 %3594, %v1922_v28   ;;  %v2928_v28 = vld [vmem:[%s4318_s13 + $0x10] sm:$0xff] }
 0x89b   : > { %v2523_v30 = vpop.xlane.xlu0 %2522 }
 0x89c   : > { %v2533_v32 = vsub.f32 %v2298_v13, %v2523_v30  ;;  %v2926_v30 = vld [vmem:[%s4318_s13] sm:$0xff] }
 0x89e   : > { %v2537_v33 = vmul.f32 1.442695, %v2533_v32  ;;  %v3018_v32 = vld [vmem:[%s4320_s15 + $0x38] sm:$0xff] }
 0x89f   : > { %v2526_v34 = vpop.xlane.xlu1 %2525 }
 0x8a0   : > { %3613 = vpow2.f32 %v2537_v33  ;;  %v2534_v37 = vsub.f32 %v2371_v16, %v2526_v34  ;;  %v3017_v33 = vld [vmem:[%s4320_s15 + $0x30] sm:$0xff]  ;;  %v3016_v34 = vld [vmem:[%s4320_s15 + $0x28] sm:$0xff] }
 0x8a2   : > { %v2539_v42 = vmul.f32 1.442695, %v2534_v37 }
 0x8a3   : > { %v2529_v35 = vpop.xlane.xlu1 %2528  ;;  %v1948_v54 = vpop.permute.xlu0 %1947 }
 0x8a4   : > { %v2535_v36 = vsub.f32 %v2444_v21, %v2529_v35  ;;  %v2079_v62 = vadd.f32 %v4147_v12, %v1948_v54  ;;  %v3015_v35 = vld [vmem:[%s4320_s15 + $0x20] sm:$0xff] }
 0x8a6   : > { %v2541_v38 = vmul.f32 1.442695, %v2535_v36  ;;  %v3014_v36 = vld [vmem:[%s4320_s15 + $0x18] sm:$0xff] }
 0x8a7   : > { %v2532_v39 = vpop.xlane.xlu1 %2531 }
 0x8a8   : > { %3615 = vpow2.f32 %v2541_v38  ;;  %v2536_v41 = vsub.f32 %v2517_v22, %v2532_v39 }
 0x8aa   : > { %v2543_v43 = vmul.f32 1.442695, %v2536_v41  ;;  %v2902_v41 = vld [vmem:[%s4317_s12] sm:$0x3] }
 0x8ab   : > { %v1953_v56 = vpop.permute.xlu1 %1952 }
 0x8ac   : > { %3617 = vpow2.f32 %v2543_v43  ;;  %v2084_v7 = vadd.f32 %v4145_v11, %v1953_v56  ;;  %v3299_v56 = vld [vmem:[%s4321_s16] ss:$0 sm:$0xff] }
 0x8ad   : > { %v3614_v44 = vpop.eup %3613  ;;  %3619 = vpow2.f32 %v2539_v42  ;;  %v2919_v42 = vrot.slane %v2902_v41, %v4081_v29 }
 0x8ae   : > { %v2545_v45 = vsel %vm1082_vm2, %v3614_v44, 0.0 }
 0x8af   : > { %2546 = vadd.xlane.f32.xlu0 %v2545_v45  ;;  %v2924_v45 = vrot.slane %v2902_v41, %v4086_v31 }
 0x8b5   : > { %v3616_v46 = vpop.eup %3615 }
 0x8b6   : > { %v2551_v47 = vsel %vm1082_vm2, %v3616_v46, 0.0 }
 0x8b7   : > { %2552 = vadd.xlane.f32.xlu0 %v2551_v47 }
 0x8b9   : > { %v3618_v48 = vpop.eup %3617 }
 0x8ba   : > { %v2554_v49 = vsel %vm1082_vm2, %v3618_v48, 0.0  ;;  %v3620_v50 = vpop.eup %3619 }
 0x8bb   : > { %2555 = vadd.xlane.f32.xlu1 %v2554_v49  ;;  %v2548_v51 = vsel %vm1082_vm2, %v3620_v50, 0.0  ;;  %v3012_v49 = vld [vmem:[%s4320_s15 + $0x8] sm:$0xff] }
 0x8bf   : > { %2549 = vadd.xlane.f32.xlu1 %v2548_v51  ;;  %v3297_v51 = vld [vmem:[%s4319_s14] ss:$0 sm:$0xff] }
 0x8cd   : > { %1962 = vperm.xlu0 %3593, %v1924_v52  }
 0x8d0   : > { %1957 = vperm.xlu1 %3594, %v1923_v53  }
 0x938   : > { %v2547_v55 = vpop.xlane.xlu0 %2546 }
 0x939   : > { %3621 = vrcp.f32 %v2547_v55 }
 0x940   : > { %v2553_v57 = vpop.xlane.xlu0 %2552 }
 0x941   : > { %3623 = vrcp.f32 %v2553_v57 }
 0x944   : > { %v2556_v58 = vpop.xlane.xlu1 %2555 }
 0x946   : > { %v3622_v60 = vpop.eup %3621 }
 0x947   : > { %v2561_v59 = vmul.f32 %v3622_v60, %v3614_v44 }
 0x948   : > { %v2550_v61 = vpop.xlane.xlu1 %2549  ;;  %v1963_v8 = vpop.permute.xlu0 %1962 }
 0x949   : > { %3625 = vrcp.f32 %v2550_v61  ;;  %3484 = vmatpush3.xpose.msk.msra.mxu0 %vm1082_vm2, %v2561_v59  ;;  %v2094_v10 = vadd.f32 %v4149_v14, %v1963_v8 }
 0x94a   : > { %3493 = vmatprep.subr.mxu0 %v3712_v19  ;;  %3627 = vrcp.f32 %v2556_v58 }
 0x94c   : > { %3486 = vmatmul.mubr.msk.f32.vlgmr.msra.gmra.mxu0 %vm1082_vm2, %v2079_v62  ;;  %v1958_v0 = vpop.permute.xlu1 %1957 }
 0x94d   : > { %3495 = vmatprep.mubr.msk.f32.mxu0 %vm3713_vm1, %v3712_v19  ;;  %v2089_v2 = vadd.f32 %v4152_v17, %v1958_v0 }
 0x94e   : > { %v3624_v63 = vpop.eup %3623 }
 0x94f   : > { %v2563_v1 = vmul.f32 %v3624_v63, %v3616_v46 }
 0x951   : > { %3494 = vmatpush3.xpose.msk.msra.mxu0 %vm1082_vm2, %v2563_v1 }
 0x952   : > { %3503 = vmatprep.subr.mxu0 %v3712_v19 }
 0x954   : > { %3496 = vmatmul.mubr.msk.f32.vlgmr.msra.gmra.mxu0 %vm1082_vm2, %v2089_v2 }
 0x955   : > { %3511 = vmatprep.mubr.msk.f32.mxu0 %vm3713_vm1, %v3712_v19  ;;  %3504 = vmatpush3.msra.mxu0 %v2929_v27 }
 0x956   : > { %v3626_v3 = vpop.eup %3625  ;;  %3505 = vmatprep.subr.mxu0 %v3712_v19 }
 0x957   : > { %v2562_v4 = vmul.f32 %v3626_v3, %v3620_v50  ;;  %v3628_v6 = vpop.eup %3627  ;;  %3506 = vmatpush3.msra.mxu0 %v2928_v28  ;;  %v3011_v50 = vld [vmem:[%s4320_s15] sm:$0xff] }
 0x958   : > { %v2564_v9 = vmul.f32 %v3628_v6, %v3618_v48  ;;  %3507 = vmatprep.subr.mxu0 %v3712_v19  ;;  %v3013_v48 = vld [vmem:[%s4320_s15 + $0x10] sm:$0xff]  ;;  %v3101_v6 = vld [vmem:[%s4322_s17] sm:$0x3] }
 0x959   : > { %3489 = vmatpush3.xpose.msk.msra.mxu1 %vm1082_vm2, %v2562_v4 }
 0x95a   : > { %3498 = vmatprep.subr.mxu1 %v3712_v19 }
 0x95c   : > { %3491 = vmatmul.mubr.msk.f32.vlgmr.msra.gmra.mxu1 %vm1082_vm2, %v2084_v7  ;;  %v3118_v7 = vrot.slane %v3101_v6, %v4081_v29 }
 0x95d   : > { %3499 = vmatpush3.xpose.msk.msra.mxu1 %vm1082_vm2, %v2564_v9  ;;  %3500 = vmatprep.mubr.msk.f32.mxu1 %vm3713_vm1, %v3712_v19 }
 0x95e   : > { %3514 = vmatprep.subr.mxu1 %v3712_v19 }
 0x960   : > { %3501 = vmatmul.mubr.msk.f32.vlgmr.msra.gmra.mxu1 %vm1082_vm2, %v2094_v10  ;;  %v3123_v10 = vrot.slane %v3101_v6, %v4086_v31 }
 0x961   : > { %3530 = vmatprep.mubr.msk.f32.mxu1 %vm3713_vm1, %v3712_v19  ;;  %3515 = vmatpush3.msra.mxu1 %v3018_v32 }
 0x962   : > { %3516 = vmatprep.subr.mxu1 %v3712_v19 }
 0x963   : > { %3517 = vmatpush3.msra.mxu1 %v3017_v33 }
 0x964   : > { %3518 = vmatprep.subr.mxu1 %v3712_v19 }
 0x965   : > { %3519 = vmatpush3.msra.mxu1 %v3016_v34 }
 0x966   : > { %3520 = vmatprep.subr.mxu1 %v3712_v19 }
 0x967   : > { %3521 = vmatpush3.msra.mxu1 %v3015_v35 }
 0x968   : > { %3522 = vmatprep.subr.mxu1 %v3712_v19 }
 0x969   : > { %3523 = vmatpush3.msra.mxu1 %v3014_v36 }
 0x96a   : > { %3524 = vmatprep.subr.mxu1 %v3712_v19 }
 0x96b   : > { %3525 = vmatpush3.msra.mxu1 %v3013_v48 }
 0x96c   : > { %3526 = vmatprep.subr.mxu1 %v3712_v19 }
 0x96d   : > { %3527 = vmatpush3.msra.mxu1 %v3012_v49 }
 0x96e   : > { %3528 = vmatprep.subr.mxu1 %v3712_v19 }
 0x96f   : > { %3529 = vmatpush3.msra.mxu1 %v3011_v50 }
 0xa0c   : > { %v2637_v11 = vpop.f32.mrf.mxu0 }
 0xa0d   : > { %2869 = vxpose.xlu1.b32.start [1/4] (short) (narrow) %v2637_v11, 8 }
 0xa0e   : > { %v3487_v12 = vpop.f32.mrf.mxu0 }
 0xa14   : > { %v2789_v13 = vpop.f32.mrf.mxu0 }
 0xa16   : > { %v3497_v5 = vpop.f32.mrf.mxu0 }
 0xa1c   : > { %v2713_v15 = vpop.f32.mrf.mxu1 }
 0xa1d   : > { %2870 = vxpose.xlu1.b32.cont [2/4] (short) (narrow) %v2713_v15, 8 }
 0xa1e   : > { %v3492_v16 = vpop.f32.mrf.mxu1 }
 0xa20   : > { %v2865_v17 = vpop.f32.mrf.mxu1 }
 0xa21   : > { %2871 = vxpose.xlu1.b32.cont [3/4] (short) (narrow) %v2789_v13, 8 }
 0xa22   : > { %v3502_v18 = vpop.f32.mrf.mxu1 }
 0xa25   : > { %2872 = vxpose.xlu1.b32.end [4/4] (short) (narrow) %v2865_v17, 8 }
 0xa95   : > { %v2885_v14 = vpop.trf.xlu1 }
 0xa96   : > { %v2901_v20 = vadd.f32 %v2885_v14, %v4090_v40  ;;  %v2927_v40 = vld [vmem:[%s4318_s13 + $0x8] sm:$0xff] }
 0xa97   : > { %3508 = vmatpush3.msra.mxu0 %v2927_v40 }
 0xa98   : > { %v2903_v21 = vsel %vm661_vm0, %v2901_v20, 0.0  ;;  %3509 = vmatprep.subr.mxu0 %v3712_v19 }
 0xa99   : > { %2904 = vadd.xlane.f32.xlu0 %v2903_v21  ;;  %3510 = vmatpush3.msra.mxu0 %v2926_v30 }
 0xb22   : > { %v2905_v22 = vpop.xlane.xlu0 %2904 }
 0xb23   : > { %v2906_v23 = vmul.f32 0.03125, %v2905_v22 }
 0xb25   : > { %v2907_v24 = vsub.f32 %v2901_v20, %v2906_v23 }
 0xb27   : > { %v2908_v25 = vmul.f32 %v2907_v24, %v2907_v24 }
 0xb29   : > { %v2909_v26 = vsel %vm661_vm0, %v2908_v25, 0.0 }
 0xb2a   : > { %2910 = vadd.xlane.f32.xlu0 %v2909_v26 }
 0xbb3   : > { %v2911_v37 = vpop.xlane.xlu0 %2910 }
 0xbb4   : > { %v2912_v38 = vmul.f32 0.03125, %v2911_v37 }
 0xbb6   : > { %v2913_v39 = vadd.f32 1e-05, %v2912_v38 }
 0xbb8   : > { %3629 = vrsqrt.f32 %v2913_v39 }
 0xbc5   : > { %v3630_v43 = vpop.eup %3629 }
 0xbc6   : > { %v2915_v44 = vmul.f32 %v3630_v43, %v2907_v24 }
 0xbc8   : > { %v2920_v46 = vmul.f32 %v2919_v42, %v2915_v44 }
 0xbca   : > { %v2925_v47 = vadd.f32 %v2924_v45, %v2920_v46 }
 0xbcc   : > { %3512 = vmatmul.mubr.msk.f32.vlgmr.msra.gmra.mxu0 %vm661_vm0, %v2925_v47 }
 0xc8c   : > { %v3006_v52 = vpop.f32.mrf.mxu0 }
 0xc8d   : > { %v3007_v53 = vadd.f32 %v3297_v51, %v3006_v52 }
 0xc8e   : > { %v3513_v54 = vpop.f32.mrf.mxu0 }
 0xc8f   : > { %v3010_v55 = vmax.f32 %v3007_v53, 0.0 }
 0xc91   : > { %3531 = vmatmul.mubr.msk.f32.vlgmr.msra.gmra.mxu1 %vm3026_vm3, %v3010_v55 }
 0xd51   : > { %v3096_v57 = vpop.f32.mrf.mxu1 }
 0xd52   : > { %v3097_v58 = vadd.f32 %v3299_v56, %v3096_v57 }
 0xd53   : > { %v3532_v60 = vpop.f32.mrf.mxu1 }
 0xd54   : > { %v3100_v19 = vadd.f32 %v3097_v58, %v2925_v47 }
 0xd56   : > { %v3102_v59 = vsel %vm661_vm0, %v3100_v19, 0.0 }
 0xd57   : > { %3103 = vadd.xlane.f32.xlu0 %v3102_v59 }
 0xde0   : > { %v3104_v61 = vpop.xlane.xlu0 %3103 }
 0xde1   : > { %v3105_v62 = vmul.f32 0.03125, %v3104_v61 }
 0xde3   : > { %v3106_v63 = vsub.f32 %v3100_v19, %v3105_v62 }
 0xde5   : > { %v3107_v0 = vmul.f32 %v3106_v63, %v3106_v63 }
 0xde7   : > { %v3108_v1 = vsel %vm661_vm0, %v3107_v0, 0.0 }
 0xde8   : > { %3109 = vadd.xlane.f32.xlu0 %v3108_v1 }
 0xe71   : > { %v3110_v2 = vpop.xlane.xlu0 %3109 }
 0xe72   : > { %v3111_v3 = vmul.f32 0.03125, %v3110_v2 }
 0xe74   : > { %v3112_v4 = vadd.f32 1e-05, %v3111_v3 }
 0xe76   : > { %3631 = vrsqrt.f32 %v3112_v4 }
 0xe83   : > { %v3632_v8 = vpop.eup %3631 }
 0xe84   : > { %v3114_v9 = vmul.f32 %v3632_v8, %v3106_v63 }
 0xe86   : > { %v3119_v11 = vmul.f32 %v3118_v7, %v3114_v9 }
 0xe88   : > { %v3124_v12 = vadd.f32 %v3123_v10, %v3119_v11 }
 0xe8a   : > { %3125 = vst.msk [vmem:[%s614_s19] sm:$0xff] %vm661_vm0, %v3124_v12 }
 0xe8b   : > { %3646 = shalt.err (!%p3643_p5)
}
 0xe8c   : > { %s3647_s23 = scalar_lea.hbm %s3139_s21, 128  ;;  %s3651_s19 = scalar_lea.hbm %s4352_s25, 256 }
 0xe8d   : > { %p3648_p6 = scmp.ne.s32.totalorder %s3139_s21, %s3647_s23  ;;  %p3652_p10 = scmp.lt.s32.totalorder %s3139_s21, %s4352_s25 }
 0xe8e   : > { %p3653_p11 = scmp.lt.s32.totalorder %s3651_s19, %s3647_s23 }
 0xe8f   : > { %p3649_p7 = pnand %p3648_p6, %p3850_p4 }
 0xe90   : > { %p3654_p12 = por %p3653_p11, %p3652_p10 }
 0xe91   : > { %p3650_p9 = pneg %p3649_p7 }
 0xe93   : > { %p3655_p13 = pnand %p3654_p12, %p3650_p9 }
 0xe95   : > { %3658 = shalt.err (!%p3655_p13)
}
 0xe96   : > { %3535 = dma.vmem_to_hbm [thread:$0]  (%p3850_p4), %s3142_s2, 128, %s3139_s21, %s3127_s20  }
 0xe97 PF: > { %s4353_s0 = sld [smem:[#allocation8_spill]] }
 0xe98   : > { %s4354_s26 = sld [smem:[#allocation5_spill]] }
 0xe9d   : > { %p3541_p0 = scmp.ge.s32.totalorder %s4353_s0, 2 }
 0xe9e   : > { %s3153_s30 = sand.u32 1, %s4354_s26  }
 0xe9f   : > { %p3538_p1 = pnand %p3541_p0, %p3857_p8  ;;  %s3154_s22 = scalar_lea.sflag [#allocation3], %s3153_s30 }
 0xea1   : > { %p3539_p2 = pneg %p3538_p1 }
 0xea3   : > { %3684 = dma.done.wait (%p3539_p2), %s3154_s22, 128  }
 0xea4   : > { %3686 = vsyncadd (%p3539_p2), %s3154_s22, 4294967168  ;;  %s31_s19 = sadd.s32 1, %s4353_s0   ;;  %s4356_s23 = sld [smem:[#allocation6_spill]] }
 0xea5   : > { %p28_p3 = scmp.ge.s32.totalorder %s31_s19, 4   ;;  %s4357_s29 = sld [smem:[#allocation12_spill]] }
 0xea6   : > { %s4358_s30 = sld [smem:[#allocation7_spill]]  ;;  %s4360_s27 = smov %s3693_s28 }
 0xea7   : > { %s4359_s0 = sld [smem:[#allocation9_spill]]  ;;  %30 = sbr.rel (!%p28_p3) target bundleno = 9 (0x9), region = 133 }
 0xeaa   : > { %s4361_s28 = smov %s4356_s23 }
 0xeac   :  { %3159 = vsyncpa [#allocation3], 1 }
 0xead   :  { %3161 = vsyncpa [#allocation3 + $0x1], 1 }

</bundles_post_ra>
